<compile_context>
chip_gen: v7x
topology: tpu7x:2x2x1
jax: 0.10.0
libtpu: 0.0.40
codegen_flags: <defaults>
</compile_context>

<pallas_src>
import functools
import math

import jax
import jax.numpy as jnp
from jax import lax
from jax.experimental import pallas as pl
from jax.experimental.pallas import tpu as pltpu

# Large negative *finite* value used both for masked (padded) keys and for the
# running-max init, so no inf-inf NaN paths can appear.
_MASK_VALUE = -0.7 * float(jnp.finfo(jnp.float32).max)


def _flash_attention_kernel(q_ref, k_ref, v_ref, o_ref,
                            qs_scr, m_scr, l_scr, acc_scr,
                            *, scale, num_heads, e_dim, d_dim,
                            block_k, kv_len, mask_keys, exp_dtype, pv_dtype):
    """One (batch, q-tile, kv-tile) flash-attention step over all heads.

    q_ref   : (1, tq, H*E)  VMEM — heads packed along lanes
    k_ref   : (1, tk, H*E)  VMEM
    v_ref   : (1, tk, H*D)  VMEM
    o_ref   : (1, tq, H*D)  VMEM — written once, on the last kv step
    qs_scr  : (tq, H*E)     VMEM — pre-scaled q, filled at kv step 0
    m_scr   : (H, tq, 128)  f32  — running max, lane-broadcast (unmasked stores)
    l_scr   : (H, tq, 128)  f32  — running softmax denominator, lane-broadcast
    acc_scr : (tq, H*D)     f32  — lane-dense output accumulator slab
    """
    H, E, D = num_heads, e_dim, d_dim
    kv_idx = pl.program_id(2)

    @pl.when(kv_idx == 0)
    def _init():
        # Hoisted q scaling: done once per q tile, not once per kv step.
        qs_scr[...] = (q_ref[0] * scale).astype(qs_scr.dtype)
        m_scr[...] = jnp.full_like(m_scr, _MASK_VALUE)
        l_scr[...] = jnp.zeros_like(l_scr)
        acc_scr[...] = jnp.zeros_like(acc_scr)

    q_all = qs_scr[...]        # (tq, H*E)  pre-scaled
    k_all = k_ref[0]           # (tk, H*E)
    v_all = v_ref[0]           # (tk, H*D)
    acc_prev = acc_scr[...]    # (tq, H*D)  single lane-dense load per kv step

    if mask_keys:
        col = lax.broadcasted_iota(jnp.int32, (1, block_k), 1) + kv_idx * block_k
        kvalid = col < kv_len                                   # (1, tk)

    acc_new = []
    for h in range(H):
        q_h = q_all[:, h * E:(h + 1) * E]                       # (tq, E)
        k_h = k_all[:, h * E:(h + 1) * E]                       # (tk, E)
        v_h = v_all[:, h * D:(h + 1) * D]                       # (tk, D)

        # QK^T on the MXU, contracting the last dims (no k transpose).
        s = lax.dot_general(q_h, k_h,
                            dimension_numbers=(((1,), (1,)), ((), ())),
                            preferred_element_type=jnp.float32)  # (tq, tk)
        if mask_keys:
            s = jnp.where(kvalid, s, _MASK_VALUE)

        m_prev = m_scr[h]                                        # (tq, 128)
        m_new = jnp.maximum(m_prev, jnp.max(s, axis=-1, keepdims=True))
        m_new1, m_prev1 = m_new[:, :1], m_prev[:, :1]            # (tq, 1)
        alpha = jnp.exp(m_prev1 - m_new1)                        # (tq, 1), EUP

        # Score-tile exponential: bf16 on v6e/v7x (bf16 EUP path — the binding
        # unit for small head dims), f32 on v5e.
        p = jnp.exp((s - m_new1).astype(exp_dtype))              # (tq, tk)
        row_sum = jnp.sum(p.astype(jnp.float32), axis=-1, keepdims=True)

        l_scr[h] = alpha * l_scr[h] + row_sum                    # unmasked (tq,128) store
        m_scr[h] = m_new                                         # unmasked (tq,128) store

        # PV on the MXU in bf16 (bf16-native on v5e/v6e/v7x); accumulate in f32.
        pv = lax.dot_general(p.astype(pv_dtype), v_h.astype(pv_dtype),
                             dimension_numbers=(((1,), (0,)), ((), ())),
                             preferred_element_type=jnp.float32)  # (tq, D)
        acc_new.append(alpha * acc_prev[:, h * D:(h + 1) * D] + pv)

    # Single lane-dense store of the whole accumulator slab per kv step.
    acc_scr[...] = jnp.concatenate(acc_new, axis=-1)

    @pl.when(kv_idx == pl.num_programs(2) - 1)
    def _finalize():
        acc = acc_scr[...]                                       # (tq, H*D)
        normed = []
        for h in range(H):
            # Exact reciprocal: only a (tq,1) vector per head, once per q tile.
            inv_l = pl.reciprocal(l_scr[h][:, :1], approx=False)
            normed.append(acc[:, h * D:(h + 1) * D] * inv_l)
        # Residual add of the (unscaled) query, as in the PyTorch module (D == E).
        out = jnp.concatenate(normed, axis=-1) + q_ref[0].astype(jnp.float32)
        o_ref[0] = out.astype(o_ref.dtype)                       # one lane-dense store


def _tpu_generation():
    try:
        kind = jax.devices()[0].device_kind.lower()
    except Exception:
        return "unknown"
    if "v5 lite" in kind or "v5lite" in kind or "v5e" in kind:
        return "v5e"
    if "v6" in kind:
        return "v6e"
    if "v7" in kind or "7x" in kind:
        return "v7x"
    return "unknown"


def _round_up(x, m):
    return ((x + m - 1) // m) * m


def full_attention(queries, keys, values, scale=None, *,
                   block_q=None, block_k=None, exp_dtype=None, pv_dtype=None):
    """queries (B,L,H,E), keys (B,S,H,E), values (B,S,H,D) -> (B,L,H,D).

    Matches HUTformer FullAttention.forward in eval mode (dropout = identity).
    Requires D == E (the module's `V + queries` residual add needs it).
    """
    B, L, H, E = queries.shape
    Bk, S, Hk, Ek = keys.shape
    Bv, Sv, Hv, D = values.shape
    if E != D:
        raise ValueError(f"FullAttention residual add requires D == E, got E={E}, D={D}")
    if (Bk, Hk, Ek) != (B, H, E) or (Bv, Sv, Hv) != (B, S, H):
        raise ValueError("inconsistent query/key/value shapes")
    if scale is None:
        scale = 1.0 / math.sqrt(E)
    scale = float(scale)

    gen = _tpu_generation()
    # Per-generation tile targets + scoped-VMEM limit.
    #   v5e: lowest HBM BW and K/V are re-streamed per q-tile -> large kv tiles.
    #   v6e: 128 MiB VMEM, 256x256 MXU -> big tiles.
    #   v7x: only 64 MiB VMEM, but these blocks are a few MiB -> tk=512 still fits.
    cfg = {
        "v5e": (256, 512, 64 << 20),
        "v6e": (256, 512, 96 << 20),
        "v7x": (256, 512, 48 << 20),
        "unknown": (256, 512, None),
    }[gen]
    if exp_dtype is None:
        # bf16 EUP path exists on v6e/v7x only; v5e has no bf16 EUP/VPU.
        exp_dtype = jnp.bfloat16 if gen in ("v6e", "v7x") else jnp.float32
    if pv_dtype is None:
        pv_dtype = jnp.bfloat16   # MXU is bf16-native on all three generations

    tq = _round_up(min(block_q or cfg[0], _round_up(L, 8)), 8)
    tk = _round_up(min(block_k or cfg[1], _round_up(S, 8)), 8)

    # v7x has 2 TensorCores sharded over the parallel grid axes: make sure both
    # get a q-tile when possible.
    if gen == "v7x" and block_q is None:
        while B * ((L + tq - 1) // tq) < 2 and tq > 8:
            tq = max(8, _round_up(tq // 2, 8))

    L_pad = _round_up(L, tq)
    S_pad = _round_up(S, tk)
    mask_keys = S_pad != S

    # Free reshapes: pack heads into the lane dimension (lane-dense blocks, no HBM
    # transpose passes). Pad L/S to tile multiples; padded keys are masked in-kernel.
    q2 = queries.reshape(B, L, H * E)
    k2 = keys.reshape(B, S, H * E)
    v2 = values.reshape(B, S, H * D)
    if L_pad != L:
        q2 = jnp.pad(q2, ((0, 0), (0, L_pad - L), (0, 0)))
    if S_pad != S:
        k2 = jnp.pad(k2, ((0, 0), (0, S_pad - S), (0, 0)))
        v2 = jnp.pad(v2, ((0, 0), (0, S_pad - S), (0, 0)))

    kernel = functools.partial(
        _flash_attention_kernel, scale=scale, num_heads=H, e_dim=E, d_dim=D,
        block_k=tk, kv_len=S, mask_keys=mask_keys,
        exp_dtype=exp_dtype, pv_dtype=pv_dtype)

    out2 = pl.pallas_call(
        kernel,
        out_shape=jax.ShapeDtypeStruct((B, L_pad, H * D), queries.dtype),
        grid_spec=pltpu.PrefetchScalarGridSpec(
            num_scalar_prefetch=0,
            grid=(B, L_pad // tq, S_pad // tk),
            in_specs=[
                pl.BlockSpec((1, tq, H * E), lambda b, qi, ki: (b, qi, 0)),
                pl.BlockSpec((1, tk, H * E), lambda b, qi, ki: (b, ki, 0)),
                pl.BlockSpec((1, tk, H * D), lambda b, qi, ki: (b, ki, 0)),
            ],
            out_specs=pl.BlockSpec((1, tq, H * D), lambda b, qi, ki: (b, qi, 0)),
            scratch_shapes=[
                pltpu.VMEM((tq, H * E), queries.dtype),   # pre-scaled q
                pltpu.VMEM((H, tq, 128), jnp.float32),    # running max (lane-broadcast)
                pltpu.VMEM((H, tq, 128), jnp.float32),    # running denominator
                pltpu.VMEM((tq, H * D), jnp.float32),     # output accumulator slab
            ],
        ),
        compiler_params=pltpu.CompilerParams(
            dimension_semantics=("parallel", "parallel", "arbitrary"),
            vmem_limit_bytes=cfg[2]),
    )(q2, k2, v2)

    if L_pad != L:
        out2 = out2[:, :L, :]
    return out2.reshape(B, L, H, D)


def _reference(queries, keys, values, scale=None):
    B, L, H, E = queries.shape
    if scale is None:
        scale = 1.0 / math.sqrt(E)
    hi = jax.lax.Precision.HIGHEST
    scores = jnp.einsum('blhe,bshe->bhls', queries, keys, precision=hi)
    A = jax.nn.softmax(scale * scores, axis=-1)
    V = jnp.einsum('bhls,bshd->blhd', A, values, precision=hi)
    return V + queries


if __name__ == "__main__":
    key = jax.random.PRNGKey(0)
    kq, kk, kv = jax.random.split(key, 3)

    # Small shapes; L and S deliberately NOT multiples of the tiles so the
    # padding + key-mask path and the multi-kv-step online softmax are exercised.
    B, L, S, H, E = 2, 24, 40, 4, 32
    D = E  # residual add in the module requires D == E

    queries = jax.random.normal(kq, (B, L, H, E), dtype=jnp.float32)
    keys_ = jax.random.normal(kk, (B, S, H, E), dtype=jnp.float32)
    values = jax.random.normal(kv, (B, S, H, D), dtype=jnp.float32)

    out = full_attention(queries, keys_, values, block_q=16, block_k=16)
    out = jax.block_until_ready(out)
    assert out.shape == (B, L, H, D)

    ref = _reference(queries, keys_, values)
    # Default per-generation fast paths (bf16 exp on v6e/v7x, bf16 PV matmul
    # everywhere) plus the MXU's reduced-precision f32 passes trade ~1e-2-level
    # error for throughput; compare against a HIGHEST-precision reference with a
    # correspondingly relaxed tolerance.  Pass exp_dtype=pv_dtype=jnp.float32 to
    # the wrapper for a near-exact path.
    assert jnp.allclose(out, ref, atol=5e-2, rtol=5e-2), (
        f"max abs err = {float(jnp.max(jnp.abs(out - ref)))}")

    print("KERNEL_OK")
</pallas_src>

<mosaic_0001>
module attributes {stable_mosaic.version = 11 : i64} {
  func.func @_flash_attention_kernel(%arg0: i32, %arg1: i32, %arg2: i32, %arg3: memref<1x16x128xf32, #tpu.memory_space<vmem>>, %arg4: memref<1x16x128xf32, #tpu.memory_space<vmem>>, %arg5: memref<1x16x128xf32, #tpu.memory_space<vmem>>, %arg6: memref<1x16x128xf32, #tpu.memory_space<vmem>>, %arg7: memref<16x128xf32, #tpu.memory_space<vmem>>, %arg8: memref<4x16x128xf32, #tpu.memory_space<vmem>>, %arg9: memref<4x16x128xf32, #tpu.memory_space<vmem>>, %arg10: memref<16x128xf32, #tpu.memory_space<vmem>>) attributes {dimension_semantics = [#tpu.dimension_semantics<parallel>, #tpu.dimension_semantics<parallel>, #tpu.dimension_semantics<arbitrary>], iteration_bounds = array<i64: 2, 2, 3>, scalar_prefetch = 0 : i64, scratch_operands = 4 : i64, tpu.core_type = #tpu.core_type<tc>, window_params = [{transform_indices = @transform_0, window_bounds = array<i64: 1, 16, 128>}, {transform_indices = @transform_1, window_bounds = array<i64: 1, 16, 128>}, {transform_indices = @transform_2, window_bounds = array<i64: 1, 16, 128>}, {transform_indices = @transform_3, window_bounds = array<i64: 1, 16, 128>}]} {
    %c0_i32 = arith.constant 0 : i32
    %0 = arith.cmpi eq, %arg2, %c0_i32 : i32
    %1 = arith.extui %0 : i1 to i32
    %c0_i32_0 = arith.constant 0 : i32
    %2 = arith.cmpi ne, %1, %c0_i32_0 : i32
    scf.if %2 {
      %c0_77 = arith.constant 0 : index
      %c0_78 = arith.constant 0 : index
      %c0_79 = arith.constant 0 : index
      %188 = vector.load %arg3[%c0_77, %c0_78, %c0_79] : memref<1x16x128xf32, #tpu.memory_space<vmem>>, vector<1x16x128xf32>
      %189 = vector.shape_cast %188 : vector<1x16x128xf32> to vector<16x128xf32>
      %cst_80 = arith.constant 0.176776692 : f32
      %190 = vector.broadcast %cst_80 : f32 to vector<16x128xf32>
      %191 = arith.mulf %189, %190 : vector<16x128xf32>
      %c0_81 = arith.constant 0 : index
      %c0_82 = arith.constant 0 : index
      %192 = vector.load %arg7[%c0_81, %c0_82] : memref<16x128xf32, #tpu.memory_space<vmem>>, vector<16x128xf32>
      tpu.vector_store %arg7[%c0_81, %c0_82], %191 {strides = array<i32>} : memref<16x128xf32, #tpu.memory_space<vmem>>, vector<16x128xf32>,
      %cst_83 = arith.constant -2.38197633E+38 : f32
      %193 = vector.broadcast %cst_83 : f32 to vector<4x16x128xf32>
      %c0_84 = arith.constant 0 : index
      %c0_85 = arith.constant 0 : index
      %c0_86 = arith.constant 0 : index
      %194 = vector.load %arg8[%c0_84, %c0_85, %c0_86] : memref<4x16x128xf32, #tpu.memory_space<vmem>>, vector<4x16x128xf32>
      tpu.vector_store %arg8[%c0_84, %c0_85, %c0_86], %193 {strides = array<i32>} : memref<4x16x128xf32, #tpu.memory_space<vmem>>, vector<4x16x128xf32>,
      %cst_87 = arith.constant 0.000000e+00 : f32
      %195 = vector.broadcast %cst_87 : f32 to vector<4x16x128xf32>
      %c0_88 = arith.constant 0 : index
      %c0_89 = arith.constant 0 : index
      %c0_90 = arith.constant 0 : index
      %196 = vector.load %arg9[%c0_88, %c0_89, %c0_90] : memref<4x16x128xf32, #tpu.memory_space<vmem>>, vector<4x16x128xf32>
      tpu.vector_store %arg9[%c0_88, %c0_89, %c0_90], %195 {strides = array<i32>} : memref<4x16x128xf32, #tpu.memory_space<vmem>>, vector<4x16x128xf32>,
      %cst_91 = arith.constant 0.000000e+00 : f32
      %197 = vector.broadcast %cst_91 : f32 to vector<16x128xf32>
      %c0_92 = arith.constant 0 : index
      %c0_93 = arith.constant 0 : index
      %198 = vector.load %arg10[%c0_92, %c0_93] : memref<16x128xf32, #tpu.memory_space<vmem>>, vector<16x128xf32>
      tpu.vector_store %arg10[%c0_92, %c0_93], %197 {strides = array<i32>} : memref<16x128xf32, #tpu.memory_space<vmem>>, vector<16x128xf32>,
    } else {
    }
    %c0 = arith.constant 0 : index
    %c0_1 = arith.constant 0 : index
    %3 = vector.load %arg7[%c0, %c0_1] : memref<16x128xf32, #tpu.memory_space<vmem>>, vector<16x128xf32>
    %c0_2 = arith.constant 0 : index
    %c0_3 = arith.constant 0 : index
    %c0_4 = arith.constant 0 : index
    %4 = vector.load %arg4[%c0_2, %c0_3, %c0_4] : memref<1x16x128xf32, #tpu.memory_space<vmem>>, vector<1x16x128xf32>
    %5 = vector.shape_cast %4 : vector<1x16x128xf32> to vector<16x128xf32>
    %c0_5 = arith.constant 0 : index
    %c0_6 = arith.constant 0 : index
    %c0_7 = arith.constant 0 : index
    %6 = vector.load %arg5[%c0_5, %c0_6, %c0_7] : memref<1x16x128xf32, #tpu.memory_space<vmem>>, vector<1x16x128xf32>
    %7 = vector.shape_cast %6 : vector<1x16x128xf32> to vector<16x128xf32>
    %c0_8 = arith.constant 0 : index
    %c0_9 = arith.constant 0 : index
    %8 = vector.load %arg10[%c0_8, %c0_9] : memref<16x128xf32, #tpu.memory_space<vmem>>, vector<16x128xf32>
    %9 = tpu.iota {dimensions = array<i32: 1>} : vector<1x16xi32>
    %c16_i32 = arith.constant 16 : i32
    %10 = arith.muli %arg2, %c16_i32 : i32
    %11 = vector.broadcast %10 : i32 to vector<1x16xi32>
    %12 = arith.addi %9, %11 : vector<1x16xi32>
    %c40_i32 = arith.constant 40 : i32
    %13 = vector.broadcast %c40_i32 : i32 to vector<1x16xi32>
    %14 = arith.cmpi slt, %12, %13 : vector<1x16xi32>
    %15 = vector.extract_strided_slice %3 {offsets = [0, 0], sizes = [16, 32], strides = [1, 1]} : vector<16x128xf32> to vector<16x32xf32>
    %16 = vector.extract_strided_slice %5 {offsets = [0, 0], sizes = [16, 32], strides = [1, 1]} : vector<16x128xf32> to vector<16x32xf32>
    %17 = vector.extract_strided_slice %7 {offsets = [0, 0], sizes = [16, 32], strides = [1, 1]} : vector<16x128xf32> to vector<16x32xf32>
    %cst = arith.constant dense<0.000000e+00> : vector<16x16xf32>
    %18 = tpu.matmul %15, %16, %cst {dimension_numbers = #tpu.dot_dimension_numbers<[1], [1], [0], [0], [0, 0, 1, 0], [], []>} : vector<16x32xf32>, vector<16x32xf32>, vector<16x16xf32> -> vector<16x16xf32>
    %cst_10 = arith.constant -2.38197633E+38 : f32
    %19 = vector.shape_cast %14 : vector<1x16xi1> to vector<1x16xi1>
    %20 = vector.broadcast %19 : vector<1x16xi1> to vector<16x16xi1>
    %21 = vector.broadcast %cst_10 : f32 to vector<16x16xf32>
    %22 = arith.select %20, %18, %21 : vector<16x16xi1>, vector<16x16xf32>
    %c0_11 = arith.constant 0 : index
    %c0_12 = arith.constant 0 : index
    %c0_13 = arith.constant 0 : index
    %23 = vector.load %arg8[%c0_11, %c0_12, %c0_13] : memref<4x16x128xf32, #tpu.memory_space<vmem>>, vector<1x16x128xf32>
    %24 = vector.shape_cast %23 : vector<1x16x128xf32> to vector<16x128xf32>
    %cst_14 = arith.constant dense<0xFF800000> : vector<16xf32>
    %25 = vector.multi_reduction <maximumf>, %22, %cst_14 [1] : vector<16x16xf32> to vector<16xf32>
    %26 = vector.shape_cast %25 : vector<16xf32> to vector<16x1xf32>
    %27 = vector.broadcast %26 : vector<16x1xf32> to vector<16x128xf32>
    %28 = arith.maximumf %24, %27 : vector<16x128xf32>
    %29 = vector.extract_strided_slice %28 {offsets = [0, 0], sizes = [16, 1], strides = [1, 1]} : vector<16x128xf32> to vector<16x1xf32>
    %30 = vector.extract_strided_slice %24 {offsets = [0, 0], sizes = [16, 1], strides = [1, 1]} : vector<16x128xf32> to vector<16x1xf32>
    %31 = arith.subf %30, %29 : vector<16x1xf32>
    %32 = math.exp %31 : vector<16x1xf32>
    %33 = vector.broadcast %29 : vector<16x1xf32> to vector<16x16xf32>
    %34 = arith.subf %22, %33 : vector<16x16xf32>
    %35 = math.exp %34 : vector<16x16xf32>
    %cst_15 = arith.constant dense<0.000000e+00> : vector<16xf32>
    %36 = vector.multi_reduction <add>, %35, %cst_15 [1] : vector<16x16xf32> to vector<16xf32>
    %37 = vector.shape_cast %36 : vector<16xf32> to vector<16x1xf32>
    %c0_16 = arith.constant 0 : index
    %c0_17 = arith.constant 0 : index
    %c0_18 = arith.constant 0 : index
    %38 = vector.load %arg9[%c0_16, %c0_17, %c0_18] : memref<4x16x128xf32, #tpu.memory_space<vmem>>, vector<1x16x128xf32>
    %39 = vector.shape_cast %38 : vector<1x16x128xf32> to vector<16x128xf32>
    %40 = vector.broadcast %32 : vector<16x1xf32> to vector<16x128xf32>
    %41 = arith.mulf %40, %39 : vector<16x128xf32>
    %42 = vector.broadcast %37 : vector<16x1xf32> to vector<16x128xf32>
    %43 = arith.addf %41, %42 : vector<16x128xf32>
    %c0_19 = arith.constant 0 : index
    %c0_20 = arith.constant 0 : index
    %c0_21 = arith.constant 0 : index
    %44 = vector.load %arg9[%c0_19, %c0_20, %c0_21] : memref<4x16x128xf32, #tpu.memory_space<vmem>>, vector<1x16x128xf32>
    %45 = vector.shape_cast %44 : vector<1x16x128xf32> to vector<16x128xf32>
    %46 = vector.shape_cast %43 : vector<16x128xf32> to vector<1x16x128xf32>
    tpu.vector_store %arg9[%c0_19, %c0_20, %c0_21], %46 {strides = array<i32>} : memref<4x16x128xf32, #tpu.memory_space<vmem>>, vector<1x16x128xf32>,
    %c0_22 = arith.constant 0 : index
    %c0_23 = arith.constant 0 : index
    %c0_24 = arith.constant 0 : index
    %47 = vector.load %arg8[%c0_22, %c0_23, %c0_24] : memref<4x16x128xf32, #tpu.memory_space<vmem>>, vector<1x16x128xf32>
    %48 = vector.shape_cast %47 : vector<1x16x128xf32> to vector<16x128xf32>
    %49 = vector.shape_cast %28 : vector<16x128xf32> to vector<1x16x128xf32>
    tpu.vector_store %arg8[%c0_22, %c0_23, %c0_24], %49 {strides = array<i32>} : memref<4x16x128xf32, #tpu.memory_space<vmem>>, vector<1x16x128xf32>,
    %50 = arith.truncf %35 : vector<16x16xf32> to vector<16x16xbf16>
    %51 = arith.truncf %17 : vector<16x32xf32> to vector<16x32xbf16>
    %cst_25 = arith.constant dense<0.000000e+00> : vector<16x32xf32>
    %52 = tpu.matmul %50, %51, %cst_25 {dimension_numbers = #tpu.dot_dimension_numbers<[1], [0], [0], [1], [0, 0, 1, 1], [], []>} : vector<16x16xbf16>, vector<16x32xbf16>, vector<16x32xf32> -> vector<16x32xf32>
    %53 = vector.extract_strided_slice %8 {offsets = [0, 0], sizes = [16, 32], strides = [1, 1]} : vector<16x128xf32> to vector<16x32xf32>
    %54 = vector.broadcast %32 : vector<16x1xf32> to vector<16x32xf32>
    %55 = arith.mulf %54, %53 : vector<16x32xf32>
    %56 = arith.addf %55, %52 : vector<16x32xf32>
    %57 = vector.extract_strided_slice %3 {offsets = [0, 32], sizes = [16, 32], strides = [1, 1]} : vector<16x128xf32> to vector<16x32xf32>
    %58 = vector.extract_strided_slice %5 {offsets = [0, 32], sizes = [16, 32], strides = [1, 1]} : vector<16x128xf32> to vector<16x32xf32>
    %59 = vector.extract_strided_slice %7 {offsets = [0, 32], sizes = [16, 32], strides = [1, 1]} : vector<16x128xf32> to vector<16x32xf32>
    %cst_26 = arith.constant dense<0.000000e+00> : vector<16x16xf32>
    %60 = tpu.matmul %57, %58, %cst_26 {dimension_numbers = #tpu.dot_dimension_numbers<[1], [1], [0], [0], [0, 0, 1, 0], [], []>} : vector<16x32xf32>, vector<16x32xf32>, vector<16x16xf32> -> vector<16x16xf32>
    %cst_27 = arith.constant -2.38197633E+38 : f32
    %61 = vector.shape_cast %14 : vector<1x16xi1> to vector<1x16xi1>
    %62 = vector.broadcast %61 : vector<1x16xi1> to vector<16x16xi1>
    %63 = vector.broadcast %cst_27 : f32 to vector<16x16xf32>
    %64 = arith.select %62, %60, %63 : vector<16x16xi1>, vector<16x16xf32>
    %c1 = arith.constant 1 : index
    %c0_28 = arith.constant 0 : index
    %c0_29 = arith.constant 0 : index
    %65 = vector.load %arg8[%c1, %c0_28, %c0_29] : memref<4x16x128xf32, #tpu.memory_space<vmem>>, vector<1x16x128xf32>
    %66 = vector.shape_cast %65 : vector<1x16x128xf32> to vector<16x128xf32>
    %cst_30 = arith.constant dense<0xFF800000> : vector<16xf32>
    %67 = vector.multi_reduction <maximumf>, %64, %cst_30 [1] : vector<16x16xf32> to vector<16xf32>
    %68 = vector.shape_cast %67 : vector<16xf32> to vector<16x1xf32>
    %69 = vector.broadcast %68 : vector<16x1xf32> to vector<16x128xf32>
    %70 = arith.maximumf %66, %69 : vector<16x128xf32>
    %71 = vector.extract_strided_slice %70 {offsets = [0, 0], sizes = [16, 1], strides = [1, 1]} : vector<16x128xf32> to vector<16x1xf32>
    %72 = vector.extract_strided_slice %66 {offsets = [0, 0], sizes = [16, 1], strides = [1, 1]} : vector<16x128xf32> to vector<16x1xf32>
    %73 = arith.subf %72, %71 : vector<16x1xf32>
    %74 = math.exp %73 : vector<16x1xf32>
    %75 = vector.broadcast %71 : vector<16x1xf32> to vector<16x16xf32>
    %76 = arith.subf %64, %75 : vector<16x16xf32>
    %77 = math.exp %76 : vector<16x16xf32>
    %cst_31 = arith.constant dense<0.000000e+00> : vector<16xf32>
    %78 = vector.multi_reduction <add>, %77, %cst_31 [1] : vector<16x16xf32> to vector<16xf32>
    %79 = vector.shape_cast %78 : vector<16xf32> to vector<16x1xf32>
    %c1_32 = arith.constant 1 : index
    %c0_33 = arith.constant 0 : index
    %c0_34 = arith.constant 0 : index
    %80 = vector.load %arg9[%c1_32, %c0_33, %c0_34] : memref<4x16x128xf32, #tpu.memory_space<vmem>>, vector<1x16x128xf32>
    %81 = vector.shape_cast %80 : vector<1x16x128xf32> to vector<16x128xf32>
    %82 = vector.broadcast %74 : vector<16x1xf32> to vector<16x128xf32>
    %83 = arith.mulf %82, %81 : vector<16x128xf32>
    %84 = vector.broadcast %79 : vector<16x1xf32> to vector<16x128xf32>
    %85 = arith.addf %83, %84 : vector<16x128xf32>
    %c1_35 = arith.constant 1 : index
    %c0_36 = arith.constant 0 : index
    %c0_37 = arith.constant 0 : index
    %86 = vector.load %arg9[%c1_35, %c0_36, %c0_37] : memref<4x16x128xf32, #tpu.memory_space<vmem>>, vector<1x16x128xf32>
    %87 = vector.shape_cast %86 : vector<1x16x128xf32> to vector<16x128xf32>
    %88 = vector.shape_cast %85 : vector<16x128xf32> to vector<1x16x128xf32>
    tpu.vector_store %arg9[%c1_35, %c0_36, %c0_37], %88 {strides = array<i32>} : memref<4x16x128xf32, #tpu.memory_space<vmem>>, vector<1x16x128xf32>,
    %c1_38 = arith.constant 1 : index
    %c0_39 = arith.constant 0 : index
    %c0_40 = arith.constant 0 : index
    %89 = vector.load %arg8[%c1_38, %c0_39, %c0_40] : memref<4x16x128xf32, #tpu.memory_space<vmem>>, vector<1x16x128xf32>
    %90 = vector.shape_cast %89 : vector<1x16x128xf32> to vector<16x128xf32>
    %91 = vector.shape_cast %70 : vector<16x128xf32> to vector<1x16x128xf32>
    tpu.vector_store %arg8[%c1_38, %c0_39, %c0_40], %91 {strides = array<i32>} : memref<4x16x128xf32, #tpu.memory_space<vmem>>, vector<1x16x128xf32>,
    %92 = arith.truncf %77 : vector<16x16xf32> to vector<16x16xbf16>
    %93 = arith.truncf %59 : vector<16x32xf32> to vector<16x32xbf16>
    %cst_41 = arith.constant dense<0.000000e+00> : vector<16x32xf32>
    %94 = tpu.matmul %92, %93, %cst_41 {dimension_numbers = #tpu.dot_dimension_numbers<[1], [0], [0], [1], [0, 0, 1, 1], [], []>} : vector<16x16xbf16>, vector<16x32xbf16>, vector<16x32xf32> -> vector<16x32xf32>
    %95 = vector.extract_strided_slice %8 {offsets = [0, 32], sizes = [16, 32], strides = [1, 1]} : vector<16x128xf32> to vector<16x32xf32>
    %96 = vector.broadcast %74 : vector<16x1xf32> to vector<16x32xf32>
    %97 = arith.mulf %96, %95 : vector<16x32xf32>
    %98 = arith.addf %97, %94 : vector<16x32xf32>
    %99 = vector.extract_strided_slice %3 {offsets = [0, 64], sizes = [16, 32], strides = [1, 1]} : vector<16x128xf32> to vector<16x32xf32>
    %100 = vector.extract_strided_slice %5 {offsets = [0, 64], sizes = [16, 32], strides = [1, 1]} : vector<16x128xf32> to vector<16x32xf32>
    %101 = vector.extract_strided_slice %7 {offsets = [0, 64], sizes = [16, 32], strides = [1, 1]} : vector<16x128xf32> to vector<16x32xf32>
    %cst_42 = arith.constant dense<0.000000e+00> : vector<16x16xf32>
    %102 = tpu.matmul %99, %100, %cst_42 {dimension_numbers = #tpu.dot_dimension_numbers<[1], [1], [0], [0], [0, 0, 1, 0], [], []>} : vector<16x32xf32>, vector<16x32xf32>, vector<16x16xf32> -> vector<16x16xf32>
    %cst_43 = arith.constant -2.38197633E+38 : f32
    %103 = vector.shape_cast %14 : vector<1x16xi1> to vector<1x16xi1>
    %104 = vector.broadcast %103 : vector<1x16xi1> to vector<16x16xi1>
    %105 = vector.broadcast %cst_43 : f32 to vector<16x16xf32>
    %106 = arith.select %104, %102, %105 : vector<16x16xi1>, vector<16x16xf32>
    %c2 = arith.constant 2 : index
    %c0_44 = arith.constant 0 : index
    %c0_45 = arith.constant 0 : index
    %107 = vector.load %arg8[%c2, %c0_44, %c0_45] : memref<4x16x128xf32, #tpu.memory_space<vmem>>, vector<1x16x128xf32>
    %108 = vector.shape_cast %107 : vector<1x16x128xf32> to vector<16x128xf32>
    %cst_46 = arith.constant dense<0xFF800000> : vector<16xf32>
    %109 = vector.multi_reduction <maximumf>, %106, %cst_46 [1] : vector<16x16xf32> to vector<16xf32>
    %110 = vector.shape_cast %109 : vector<16xf32> to vector<16x1xf32>
    %111 = vector.broadcast %110 : vector<16x1xf32> to vector<16x128xf32>
    %112 = arith.maximumf %108, %111 : vector<16x128xf32>
    %113 = vector.extract_strided_slice %112 {offsets = [0, 0], sizes = [16, 1], strides = [1, 1]} : vector<16x128xf32> to vector<16x1xf32>
    %114 = vector.extract_strided_slice %108 {offsets = [0, 0], sizes = [16, 1], strides = [1, 1]} : vector<16x128xf32> to vector<16x1xf32>
    %115 = arith.subf %114, %113 : vector<16x1xf32>
    %116 = math.exp %115 : vector<16x1xf32>
    %117 = vector.broadcast %113 : vector<16x1xf32> to vector<16x16xf32>
    %118 = arith.subf %106, %117 : vector<16x16xf32>
    %119 = math.exp %118 : vector<16x16xf32>
    %cst_47 = arith.constant dense<0.000000e+00> : vector<16xf32>
    %120 = vector.multi_reduction <add>, %119, %cst_47 [1] : vector<16x16xf32> to vector<16xf32>
    %121 = vector.shape_cast %120 : vector<16xf32> to vector<16x1xf32>
    %c2_48 = arith.constant 2 : index
    %c0_49 = arith.constant 0 : index
    %c0_50 = arith.constant 0 : index
    %122 = vector.load %arg9[%c2_48, %c0_49, %c0_50] : memref<4x16x128xf32, #tpu.memory_space<vmem>>, vector<1x16x128xf32>
    %123 = vector.shape_cast %122 : vector<1x16x128xf32> to vector<16x128xf32>
    %124 = vector.broadcast %116 : vector<16x1xf32> to vector<16x128xf32>
    %125 = arith.mulf %124, %123 : vector<16x128xf32>
    %126 = vector.broadcast %121 : vector<16x1xf32> to vector<16x128xf32>
    %127 = arith.addf %125, %126 : vector<16x128xf32>
    %c2_51 = arith.constant 2 : index
    %c0_52 = arith.constant 0 : index
    %c0_53 = arith.constant 0 : index
    %128 = vector.load %arg9[%c2_51, %c0_52, %c0_53] : memref<4x16x128xf32, #tpu.memory_space<vmem>>, vector<1x16x128xf32>
    %129 = vector.shape_cast %128 : vector<1x16x128xf32> to vector<16x128xf32>
    %130 = vector.shape_cast %127 : vector<16x128xf32> to vector<1x16x128xf32>
    tpu.vector_store %arg9[%c2_51, %c0_52, %c0_53], %130 {strides = array<i32>} : memref<4x16x128xf32, #tpu.memory_space<vmem>>, vector<1x16x128xf32>,
    %c2_54 = arith.constant 2 : index
    %c0_55 = arith.constant 0 : index
    %c0_56 = arith.constant 0 : index
    %131 = vector.load %arg8[%c2_54, %c0_55, %c0_56] : memref<4x16x128xf32, #tpu.memory_space<vmem>>, vector<1x16x128xf32>
    %132 = vector.shape_cast %131 : vector<1x16x128xf32> to vector<16x128xf32>
    %133 = vector.shape_cast %112 : vector<16x128xf32> to vector<1x16x128xf32>
    tpu.vector_store %arg8[%c2_54, %c0_55, %c0_56], %133 {strides = array<i32>} : memref<4x16x128xf32, #tpu.memory_space<vmem>>, vector<1x16x128xf32>,
    %134 = arith.truncf %119 : vector<16x16xf32> to vector<16x16xbf16>
    %135 = arith.truncf %101 : vector<16x32xf32> to vector<16x32xbf16>
    %cst_57 = arith.constant dense<0.000000e+00> : vector<16x32xf32>
    %136 = tpu.matmul %134, %135, %cst_57 {dimension_numbers = #tpu.dot_dimension_numbers<[1], [0], [0], [1], [0, 0, 1, 1], [], []>} : vector<16x16xbf16>, vector<16x32xbf16>, vector<16x32xf32> -> vector<16x32xf32>
    %137 = vector.extract_strided_slice %8 {offsets = [0, 64], sizes = [16, 32], strides = [1, 1]} : vector<16x128xf32> to vector<16x32xf32>
    %138 = vector.broadcast %116 : vector<16x1xf32> to vector<16x32xf32>
    %139 = arith.mulf %138, %137 : vector<16x32xf32>
    %140 = arith.addf %139, %136 : vector<16x32xf32>
    %141 = vector.extract_strided_slice %3 {offsets = [0, 96], sizes = [16, 32], strides = [1, 1]} : vector<16x128xf32> to vector<16x32xf32>
    %142 = vector.extract_strided_slice %5 {offsets = [0, 96], sizes = [16, 32], strides = [1, 1]} : vector<16x128xf32> to vector<16x32xf32>
    %143 = vector.extract_strided_slice %7 {offsets = [0, 96], sizes = [16, 32], strides = [1, 1]} : vector<16x128xf32> to vector<16x32xf32>
    %cst_58 = arith.constant dense<0.000000e+00> : vector<16x16xf32>
    %144 = tpu.matmul %141, %142, %cst_58 {dimension_numbers = #tpu.dot_dimension_numbers<[1], [1], [0], [0], [0, 0, 1, 0], [], []>} : vector<16x32xf32>, vector<16x32xf32>, vector<16x16xf32> -> vector<16x16xf32>
    %cst_59 = arith.constant -2.38197633E+38 : f32
    %145 = vector.shape_cast %14 : vector<1x16xi1> to vector<1x16xi1>
    %146 = vector.broadcast %145 : vector<1x16xi1> to vector<16x16xi1>
    %147 = vector.broadcast %cst_59 : f32 to vector<16x16xf32>
    %148 = arith.select %146, %144, %147 : vector<16x16xi1>, vector<16x16xf32>
    %c3 = arith.constant 3 : index
    %c0_60 = arith.constant 0 : index
    %c0_61 = arith.constant 0 : index
    %149 = vector.load %arg8[%c3, %c0_60, %c0_61] : memref<4x16x128xf32, #tpu.memory_space<vmem>>, vector<1x16x128xf32>
    %150 = vector.shape_cast %149 : vector<1x16x128xf32> to vector<16x128xf32>
    %cst_62 = arith.constant dense<0xFF800000> : vector<16xf32>
    %151 = vector.multi_reduction <maximumf>, %148, %cst_62 [1] : vector<16x16xf32> to vector<16xf32>
    %152 = vector.shape_cast %151 : vector<16xf32> to vector<16x1xf32>
    %153 = vector.broadcast %152 : vector<16x1xf32> to vector<16x128xf32>
    %154 = arith.maximumf %150, %153 : vector<16x128xf32>
    %155 = vector.extract_strided_slice %154 {offsets = [0, 0], sizes = [16, 1], strides = [1, 1]} : vector<16x128xf32> to vector<16x1xf32>
    %156 = vector.extract_strided_slice %150 {offsets = [0, 0], sizes = [16, 1], strides = [1, 1]} : vector<16x128xf32> to vector<16x1xf32>
    %157 = arith.subf %156, %155 : vector<16x1xf32>
    %158 = math.exp %157 : vector<16x1xf32>
    %159 = vector.broadcast %155 : vector<16x1xf32> to vector<16x16xf32>
    %160 = arith.subf %148, %159 : vector<16x16xf32>
    %161 = math.exp %160 : vector<16x16xf32>
    %cst_63 = arith.constant dense<0.000000e+00> : vector<16xf32>
    %162 = vector.multi_reduction <add>, %161, %cst_63 [1] : vector<16x16xf32> to vector<16xf32>
    %163 = vector.shape_cast %162 : vector<16xf32> to vector<16x1xf32>
    %c3_64 = arith.constant 3 : index
    %c0_65 = arith.constant 0 : index
    %c0_66 = arith.constant 0 : index
    %164 = vector.load %arg9[%c3_64, %c0_65, %c0_66] : memref<4x16x128xf32, #tpu.memory_space<vmem>>, vector<1x16x128xf32>
    %165 = vector.shape_cast %164 : vector<1x16x128xf32> to vector<16x128xf32>
    %166 = vector.broadcast %158 : vector<16x1xf32> to vector<16x128xf32>
    %167 = arith.mulf %166, %165 : vector<16x128xf32>
    %168 = vector.broadcast %163 : vector<16x1xf32> to vector<16x128xf32>
    %169 = arith.addf %167, %168 : vector<16x128xf32>
    %c3_67 = arith.constant 3 : index
    %c0_68 = arith.constant 0 : index
    %c0_69 = arith.constant 0 : index
    %170 = vector.load %arg9[%c3_67, %c0_68, %c0_69] : memref<4x16x128xf32, #tpu.memory_space<vmem>>, vector<1x16x128xf32>
    %171 = vector.shape_cast %170 : vector<1x16x128xf32> to vector<16x128xf32>
    %172 = vector.shape_cast %169 : vector<16x128xf32> to vector<1x16x128xf32>
    tpu.vector_store %arg9[%c3_67, %c0_68, %c0_69], %172 {strides = array<i32>} : memref<4x16x128xf32, #tpu.memory_space<vmem>>, vector<1x16x128xf32>,
    %c3_70 = arith.constant 3 : index
    %c0_71 = arith.constant 0 : index
    %c0_72 = arith.constant 0 : index
    %173 = vector.load %arg8[%c3_70, %c0_71, %c0_72] : memref<4x16x128xf32, #tpu.memory_space<vmem>>, vector<1x16x128xf32>
    %174 = vector.shape_cast %173 : vector<1x16x128xf32> to vector<16x128xf32>
    %175 = vector.shape_cast %154 : vector<16x128xf32> to vector<1x16x128xf32>
    tpu.vector_store %arg8[%c3_70, %c0_71, %c0_72], %175 {strides = array<i32>} : memref<4x16x128xf32, #tpu.memory_space<vmem>>, vector<1x16x128xf32>,
    %176 = arith.truncf %161 : vector<16x16xf32> to vector<16x16xbf16>
    %177 = arith.truncf %143 : vector<16x32xf32> to vector<16x32xbf16>
    %cst_73 = arith.constant dense<0.000000e+00> : vector<16x32xf32>
    %178 = tpu.matmul %176, %177, %cst_73 {dimension_numbers = #tpu.dot_dimension_numbers<[1], [0], [0], [1], [0, 0, 1, 1], [], []>} : vector<16x16xbf16>, vector<16x32xbf16>, vector<16x32xf32> -> vector<16x32xf32>
    %179 = vector.extract_strided_slice %8 {offsets = [0, 96], sizes = [16, 32], strides = [1, 1]} : vector<16x128xf32> to vector<16x32xf32>
    %180 = vector.broadcast %158 : vector<16x1xf32> to vector<16x32xf32>
    %181 = arith.mulf %180, %179 : vector<16x32xf32>
    %182 = arith.addf %181, %178 : vector<16x32xf32>
    %183 = tpu.concatenate %56, %98, %140, %182 in 1 : vector<16x32xf32>, vector<16x32xf32>, vector<16x32xf32>, vector<16x32xf32> -> vector<16x128xf32>
    %c0_74 = arith.constant 0 : index
    %c0_75 = arith.constant 0 : index
    %184 = vector.load %arg10[%c0_74, %c0_75] : memref<16x128xf32, #tpu.memory_space<vmem>>, vector<16x128xf32>
    tpu.vector_store %arg10[%c0_74, %c0_75], %183 {strides = array<i32>} : memref<16x128xf32, #tpu.memory_space<vmem>>, vector<16x128xf32>,
    %c2_i32 = arith.constant 2 : i32
    %185 = arith.cmpi eq, %arg2, %c2_i32 : i32
    %186 = arith.extui %185 : i1 to i32
    %c0_i32_76 = arith.constant 0 : i32
    %187 = arith.cmpi ne, %186, %c0_i32_76 : i32
    scf.if %187 {
      %c0_77 = arith.constant 0 : index
      %c0_78 = arith.constant 0 : index
      %188 = vector.load %arg10[%c0_77, %c0_78] : memref<16x128xf32, #tpu.memory_space<vmem>>, vector<16x128xf32>
      %c0_79 = arith.constant 0 : index
      %c0_80 = arith.constant 0 : index
      %c0_81 = arith.constant 0 : index
      %189 = vector.load %arg9[%c0_79, %c0_80, %c0_81] : memref<4x16x128xf32, #tpu.memory_space<vmem>>, vector<1x16x128xf32>
      %190 = vector.shape_cast %189 : vector<1x16x128xf32> to vector<16x128xf32>
      %191 = vector.extract_strided_slice %190 {offsets = [0, 0], sizes = [16, 1], strides = [1, 1]} : vector<16x128xf32> to vector<16x1xf32>
      %192 = tpu.reciprocal %191 : vector<16x1xf32> -> vector<16x1xf32>
      %193 = vector.extract_strided_slice %188 {offsets = [0, 0], sizes = [16, 32], strides = [1, 1]} : vector<16x128xf32> to vector<16x32xf32>
      %194 = vector.broadcast %192 : vector<16x1xf32> to vector<16x32xf32>
      %195 = arith.mulf %193, %194 : vector<16x32xf32>
      %c1_82 = arith.constant 1 : index
      %c0_83 = arith.constant 0 : index
      %c0_84 = arith.constant 0 : index
      %196 = vector.load %arg9[%c1_82, %c0_83, %c0_84] : memref<4x16x128xf32, #tpu.memory_space<vmem>>, vector<1x16x128xf32>
      %197 = vector.shape_cast %196 : vector<1x16x128xf32> to vector<16x128xf32>
      %198 = vector.extract_strided_slice %197 {offsets = [0, 0], sizes = [16, 1], strides = [1, 1]} : vector<16x128xf32> to vector<16x1xf32>
      %199 = tpu.reciprocal %198 : vector<16x1xf32> -> vector<16x1xf32>
      %200 = vector.extract_strided_slice %188 {offsets = [0, 32], sizes = [16, 32], strides = [1, 1]} : vector<16x128xf32> to vector<16x32xf32>
      %201 = vector.broadcast %199 : vector<16x1xf32> to vector<16x32xf32>
      %202 = arith.mulf %200, %201 : vector<16x32xf32>
      %c2_85 = arith.constant 2 : index
      %c0_86 = arith.constant 0 : index
      %c0_87 = arith.constant 0 : index
      %203 = vector.load %arg9[%c2_85, %c0_86, %c0_87] : memref<4x16x128xf32, #tpu.memory_space<vmem>>, vector<1x16x128xf32>
      %204 = vector.shape_cast %203 : vector<1x16x128xf32> to vector<16x128xf32>
      %205 = vector.extract_strided_slice %204 {offsets = [0, 0], sizes = [16, 1], strides = [1, 1]} : vector<16x128xf32> to vector<16x1xf32>
      %206 = tpu.reciprocal %205 : vector<16x1xf32> -> vector<16x1xf32>
      %207 = vector.extract_strided_slice %188 {offsets = [0, 64], sizes = [16, 32], strides = [1, 1]} : vector<16x128xf32> to vector<16x32xf32>
      %208 = vector.broadcast %206 : vector<16x1xf32> to vector<16x32xf32>
      %209 = arith.mulf %207, %208 : vector<16x32xf32>
      %c3_88 = arith.constant 3 : index
      %c0_89 = arith.constant 0 : index
      %c0_90 = arith.constant 0 : index
      %210 = vector.load %arg9[%c3_88, %c0_89, %c0_90] : memref<4x16x128xf32, #tpu.memory_space<vmem>>, vector<1x16x128xf32>
      %211 = vector.shape_cast %210 : vector<1x16x128xf32> to vector<16x128xf32>
      %212 = vector.extract_strided_slice %211 {offsets = [0, 0], sizes = [16, 1], strides = [1, 1]} : vector<16x128xf32> to vector<16x1xf32>
      %213 = tpu.reciprocal %212 : vector<16x1xf32> -> vector<16x1xf32>
      %214 = vector.extract_strided_slice %188 {offsets = [0, 96], sizes = [16, 32], strides = [1, 1]} : vector<16x128xf32> to vector<16x32xf32>
      %215 = vector.broadcast %213 : vector<16x1xf32> to vector<16x32xf32>
      %216 = arith.mulf %214, %215 : vector<16x32xf32>
      %217 = tpu.concatenate %195, %202, %209, %216 in 1 : vector<16x32xf32>, vector<16x32xf32>, vector<16x32xf32>, vector<16x32xf32> -> vector<16x128xf32>
      %c0_91 = arith.constant 0 : index
      %c0_92 = arith.constant 0 : index
      %c0_93 = arith.constant 0 : index
      %218 = vector.load %arg3[%c0_91, %c0_92, %c0_93] : memref<1x16x128xf32, #tpu.memory_space<vmem>>, vector<1x16x128xf32>
      %219 = vector.shape_cast %218 : vector<1x16x128xf32> to vector<16x128xf32>
      %220 = arith.addf %217, %219 : vector<16x128xf32>
      %c0_94 = arith.constant 0 : index
      %c0_95 = arith.constant 0 : index
      %c0_96 = arith.constant 0 : index
      %221 = vector.load %arg6[%c0_94, %c0_95, %c0_96] : memref<1x16x128xf32, #tpu.memory_space<vmem>>, vector<1x16x128xf32>
      %222 = vector.shape_cast %221 : vector<1x16x128xf32> to vector<16x128xf32>
      %223 = vector.shape_cast %220 : vector<16x128xf32> to vector<1x16x128xf32>
      tpu.vector_store %arg6[%c0_94, %c0_95, %c0_96], %223 {strides = array<i32>} : memref<1x16x128xf32, #tpu.memory_space<vmem>>, vector<1x16x128xf32>,
    } else {
    }
    return
  }
  func.func @transform_0(%arg0: i32, %arg1: i32, %arg2: i32) -> (i32, i32, i32) {
    %c0_i32 = arith.constant 0 : i32
    %c0_i32_0 = arith.constant 0 : i32
    return %arg0, %arg1, %c0_i32 : i32, i32, i32
  }
  func.func @transform_1(%arg0: i32, %arg1: i32, %arg2: i32) -> (i32, i32, i32) {
    %c0_i32 = arith.constant 0 : i32
    %c0_i32_0 = arith.constant 0 : i32
    return %arg0, %arg2, %c0_i32 : i32, i32, i32
  }
  func.func @transform_2(%arg0: i32, %arg1: i32, %arg2: i32) -> (i32, i32, i32) {
    %c0_i32 = arith.constant 0 : i32
    %c0_i32_0 = arith.constant 0 : i32
    return %arg0, %arg2, %c0_i32 : i32, i32, i32
  }
  func.func @transform_3(%arg0: i32, %arg1: i32, %arg2: i32) -> (i32, i32, i32) {
    %c0_i32 = arith.constant 0 : i32
    %c0_i32_0 = arith.constant 0 : i32
    return %arg0, %arg1, %c0_i32 : i32, i32, i32
  }
}

</mosaic_0001>

<bundles_post_ra>
// kernel: tpu_custom_call.1
= control target key start
LH: loop header
LB: loop body
LE: loop exit
PB: predicated region body
PF: predicated region fallthrough
CT: control target
= control target key end

     0   :  { %s2751_s0 = inlined_call_operand.hbm [shape: f32[2,32,128], index: 0, kind: input, shape index: {}]   ;;  %s2752_s1 = inlined_call_operand.hbm [shape: f32[2,48,128], index: 1, kind: input, shape index: {}]   ;;  %s2753_s2 = inlined_call_operand.hbm [shape: f32[2,48,128], index: 2, kind: input, shape index: {}]   ;;  %s2754_s3 = inlined_call_operand.hbm [shape: f32[2,32,128], index: 3, kind: output, shape index: {}]  }
   0x1   :  { %2782 = sst [smem:[#allocation30_spill]] %s2752_s1 }
   0x2   :  { %2783 = sst [smem:[#allocation31_spill]] %s2754_s3 }
   0x3   :  { %8 = vsyncpa [#allocation7], 0 }
   0x4   :  { %10 = vsyncpa [#allocation7 + $0x1], 0 }
   0x5   :  { %11 = vsyncpa [#allocation10], 0 }
   0x6   :  { %13 = vsyncpa [#allocation10 + $0x1], 0 }
   0x7   :  { %14 = vsyncpa [#allocation8], 0 }
   0x8   :  { %16 = vsyncpa [#allocation8 + $0x1], 0  ;;  %s2069_s12 = smov 0   ;;  %s2071_s13 = smov 0  }
   0x9   :  { %s2073_s14 = smov 0   ;;  %s2075_s15 = smov 0  }
   0xa   :  { %s2077_s16 = smov 0   ;;  %s2079_s17 = smov 0  }
   0xb   :  { %s2081_s18 = smov 0   ;;  %s2083_s19 = smov 0  }
   0xc   :  { %s2085_s20 = smov 0   ;;  %s2087_s21 = smov 0  }
   0xd   :  { %s2089_s22 = smov 0   ;;  %s2091_s23 = smov 0  }
   0xe   :  { %s2093_s24 = smov 0  }
   0xf LB: > { %2784 = sst [smem:[#allocation16_spill]] %s1986_s13  ;;  %s2133_s25 = sadd.s32 4294967295, %s2030_s24   ;;  %s2030_s24 = sphi %s2093_s24, %s22_s24   ;;  %s2026_s23 = sphi %s2091_s23, %s2853_s23   ;;  %s2022_s22 = sphi %s2089_s22, %s2843_s22   ;;  %s2018_s21 = sphi %s2087_s21, %s2852_s21   ;;  %s2014_s20 = sphi %s2085_s20, %s2851_s20   ;;  %s2010_s19 = sphi %s2083_s19, %s2842_s19   ;;  %s2006_s18 = sphi %s2081_s18, %s2850_s18   ;;  %s2002_s17 = sphi %s2079_s17, %s2849_s17   ;;  %s1998_s16 = sphi %s2077_s16, %s2848_s16   ;;  %s1994_s15 = sphi %s2075_s15, %s2847_s15   ;;  %s1990_s14 = sphi %s2073_s14, %s2846_s14   ;;  %s1986_s13 = sphi %s2071_s13, %s2845_s13   ;;  %s1982_s12 = sphi %s2069_s12, %s2839_s12  }
  0x10   : > { %2785 = sst [smem:[#allocation17_spill]] %s1994_s15  ;;  %s34_s26 = sadd.s32 1, %s2018_s21 }
  0x11   : > { %2786 = sst [smem:[#allocation18_spill]] %s1998_s16  ;;  %p2136_p0 = scmp.ge.s32.totalorder %s34_s26, 3 }
  0x12   : > { %2787 = sst [smem:[#allocation19_spill]] %s2006_s18  ;;  %p2761_p1 = scmp.eq.s32.totalorder %s2030_s24, 0 }
  0x13   : > { %2788 = sst [smem:[#allocation20_spill]] %s2010_s19  ;;  %p2760_p2 = scmp.eq.s32.totalorder %s2133_s25, 0 }
  0x14   : > { %2789 = sst [smem:[#allocation21_spill]] %s2014_s20  ;;  %s2855_s26 = smov (%p2136_p0, %s34_s26), 0 }
  0x15   : > { %2790 = sst [smem:[#allocation22_spill]] %s2022_s22  ;;  %p85_p3 = scmp.ne.s32.totalorder %s1990_s14, %s1986_s13 }
  0x16   : > { %2791 = sst [smem:[#allocation23_spill]] %s2133_s25  ;;  %p91_p4 = scmp.ne.s32.totalorder %s1986_s13, %s1982_s12 }
  0x17   : > { %p87_p5 = por %p85_p3, %p2761_p1  ;;  %p2759_p7 = scmp.lt.s32.totalorder %s2030_s24, 12 }
  0x18   : > { %p2157_p6 = por %p91_p4, %p2760_p2  ;;  %s194_s5 = sand.u32 1, %s2030_s24  }
  0x19   : > { %s196_s6 = sand.u32 1, %s1990_s14   ;;  %s1449_s8 = sshll.u32 %s2018_s21, 1 }
  0x1a   : > { %s2793_s4 = scalar_select %p2157_p6, 1, 0 }
  0x1b   : > { %s2164_s7 = sshll.u32 %s196_s6, 4  ;;  %s1588_s9 = smul.u32 6, %s2026_s23 }
  0x1c   : > { %2794 = sst [smem:[#allocation24_spill]] %s2793_s4  ;;  %s198_s10 = scalar_lea.vmem [#allocation9], %s2164_s7 }
  0x1d   : > { %s207_s11 = sshll.u32 %s198_s10, 4  ;;  %p2173_p8 = pnand %p2759_p7, %p87_p5  ;;  %s2169_s11 = int_to_ptr.vmem [resolvable:$true] %s207_s11 }
  0x1e   : > { %s204_s29 = sadd.s32 %s1588_s9, %s1449_s8  ;;  %s2796_s1 = sld [smem:[#allocation30_spill]] }
  0x1f   : > { %s1450_s30 = sshll.u32 %s204_s29, 7  ;;  %s2187_s18 = scalar_lea.sflag [#allocation10], %s194_s5 }
  0x20   : > { %s2185_s10 = scalar_lea.hbm %s2753_s2, %s1450_s30  ;;  %p1800_p10 = pneg %p2173_p8 }
  0x24   : > { %s2180_s6 = scalar_lea.hbm %s2796_s1, %s1450_s30  ;;  %s1803_s19 = scalar_lea.hbm %s2796_s1, 1536 }
  0x25   : > { %s1798_s4 = scalar_lea.hbm %s2180_s6, 256  ;;  %p1804_p13 = scmp.lt.u32.totalorder %s2180_s6, %s2796_s1 }
  0x26   : > { %p1799_p9 = scmp.ne.s32.totalorder %s2180_s6, %s1798_s4  ;;  %p1805_p3 = scmp.lt.u32.totalorder %s1803_s19, %s1798_s4 }
  0x27   : > { %p1807_p5 = scmp.lt.u32.totalorder %s1798_s4, %s2180_s6 }
  0x28   : > { %p1801_p11 = pnand %p1800_p10, %p1799_p9  ;;  %p1806_p4 = por %p1805_p3, %p1804_p13 }
  0x2a   : > { %p1802_p12 = pneg %p1801_p11  ;;  %p1808_p7 = por %p1807_p5, %p1806_p4 }
  0x2c   : > { %p1809_p2 = pnand %p1808_p7, %p1802_p12 }
  0x2e   : > { %1812 = shalt.err (!%p1809_p2)
}
  0x2f   : > { %s1813_s30 = scalar_lea.vmem %s2169_s11, 256  ;;  %s2032_s5 = smov [#allocation9]  }
  0x30   : > { %p1814_p9 = scmp.ne.s32.totalorder %s2169_s11, %s1813_s30  ;;  %s1818_s8 = sshll.u32 %s2032_s5, 4  ;;  %s1819_s8 = int_to_ptr.vmem [resolvable:$false] %s1818_s8 }
  0x31   : > { %s1820_s9 = scalar_lea.vmem %s1819_s8, 512  ;;  %p1821_p6 = scmp.lt.s32.totalorder %s2169_s11, %s1819_s8 }
  0x32   : > { %p1816_p11 = pnand %p1814_p9, %p1800_p10  ;;  %p1822_p13 = scmp.lt.s32.totalorder %s1820_s9, %s1813_s30 }
  0x34   : > { %p1817_p1 = pneg %p1816_p11  ;;  %p1823_p3 = por %p1822_p13, %p1821_p6 }
  0x36   : > { %p1824_p4 = pnand %p1823_p3, %p1817_p1 }
  0x38   : > { %1827 = shalt.err (!%p1824_p4)
}
  0x39   : > { %s2763_s4 = smov 128   ;;  %s2765_s3 = smov 8  }
  0x3a   : > { %1604 = dma.hbm_to_vmem [thread:$0]  (!%p2173_p8), %s2180_s6, 256, %s2169_s11, %s2187_s18, %s2763_s4, %s2763_s4, %s2765_s3  }
  0x3b   : > { %s221_s28 = scalar_lea.vmem [#allocation11], %s2164_s7  ;;  %p1454_p1 = scmp.ge.s32.totalorder %s2030_s24, 1 }
  0x3c   : > { %s230_s19 = sshll.u32 %s221_s28, 4  ;;  %p238_p2 = scmp.lt.s32.totalorder %s2030_s24, 13  ;;  %s2220_s19 = int_to_ptr.vmem [resolvable:$true] %s230_s19 }
  0x3d   : > { %s1441_s29 = sadd.s32 4294967294, %s2030_s24   ;;  %s37_s30 = sadd.s32 1, %s2022_s22 }
  0x3e   : > { %p2223_p6 = pnand %p1454_p1, %p238_p2  ;;  %s50_s11 = sadd.s32 1, %s2002_s17 }
  0x3f   : > { %s2857_s30 = smov (!%p2136_p0, %s37_s30), %s2022_s22  ;;  %p57_p7 = scmp.ne.s32.totalorder %s2002_s17, %s1998_s16 }
  0x40   : > { %s2797_s20 = scalar_select %p2223_p6, 1, 0 }
  0x41   : > { %p63_p12 = scmp.ne.s32.totalorder %s1998_s16, %s1994_s15  ;;  %p39_p5 = scmp.ge.s32.totalorder %s2857_s30, 2 }
  0x42   : > { %p145_p9 = scmp.eq.s32.totalorder %s2133_s25, 11  ;;  %p2798_p11 = scmp.eq.s32.totalorder %s2030_s24, 0 }
  0x43   : > { %p2800_p3 = scmp.eq.s32.totalorder %s2133_s25, 0  ;;  %s2859_s30 = smov (%p39_p5, %s2857_s30), 0 }
  0x44   : > { %p2240_p13 = por %p2798_p11, %p57_p7  ;;  %2803 = sst [smem:[#allocation26_spill]] %s2859_s30 }
  0x45   : > { %p2249_p4 = por %p2800_p3, %p63_p12  ;;  %s2804_s6 = sadd.s32 1, %s2026_s23 }
  0x46   : > { %s2861_s6 = smov (!%p39_p5, %s2804_s6), %s2026_s23  ;;  %s46_s5 = ssub.s32 %s2022_s22, %s2859_s30 }
  0x47   : > { %s2801_s27 = scalar_select %p2249_p4, 1, 0 }
  0x48   : > { %p2260_p0 = por %p145_p9, %p57_p7  ;;  %p43_p1 = scmp.ge.s32.totalorder %s2861_s6, 2 }
  0x49   : > { %2802 = sst [smem:[#allocation25_spill]] %s2801_s27  ;;  %p151_p2 = scmp.eq.s32.totalorder %s1441_s29, 11 }
  0x4a   : > { %s2805_s8 = scalar_select %p2260_p0, 1, 0 }
  0x4b   : > { %s2779_s9 = sand.u32 1, %s2002_s17   ;;  %s1445_s28 = sshll.u32 %s2022_s22, 1 }
  0x4c   : > { %2806 = sst [smem:[#allocation27_spill]] %s2805_s8  ;;  %s2863_s6 = smov (%p43_p1, %s2861_s6), 0 }
  0x4d   : > { %2807 = sst [smem:[#allocation28_spill]] %s2863_s6  ;;  %p2271_p11 = por %p151_p2, %p63_p12 }
  0x4e   : > { %s45_s3 = ssub.s32 %s2026_s23, %s2863_s6  ;;  %s1444_s1 = sshll.u32 %s2779_s9, 4 }
  0x4f   : > { %s2808_s4 = scalar_select %p2271_p11, 1, 0 }
  0x50   : > { %s47_s30 = sor.u32 %s46_s5, %s45_s3  ;;  %s2810_s8 = ssub.s32 %s2018_s21, %s2855_s26 }
  0x51   : > { %2809 = sst [smem:[#allocation29_spill]] %s2808_s4  ;;  %s75_s29 = sor.u32 %s2810_s8, %s45_s3 }
  0x52   : > { %p48_p7 = scmp.eq.s32.totalorder %s47_s30, 0  ;;  %p76_p5 = scmp.eq.s32.totalorder %s75_s29, 0 }
  0x53   : > { %s1446_s22 = sshll.u32 %s2026_s23, 2  ;;  %s2811_s13 = sadd.s32 1, %s1990_s14 }
  0x54   : > { %s2284_s15 = scalar_select %p48_p7, %s2002_s17, %s50_s11  }
  0x55   : > { %s2289_s25 = scalar_select %p76_p5, %s1990_s14, %s2811_s13  }
  0x56   : > { %s181_s4 = sadd.s32 %s1446_s22, %s1445_s28  ;;  %s175_s6 = scalar_lea.vmem [#allocation6], %s1444_s1 }
  0x57   : > { %s184_s27 = sshll.u32 %s175_s6, 4  ;;  %s1447_s16 = sshll.u32 %s181_s4, 7  ;;  %s2291_s27 = int_to_ptr.vmem [resolvable:$true] %s184_s27 }
  0x58   : > { %s2296_s3 = scalar_lea.hbm %s2751_s0, %s1447_s16  ;;  %p2812_p12 = scmp.lt.s32.totalorder %s2030_s24, 12 }
  0x59   : > { %s1828_s13 = scalar_lea.hbm %s2185_s10, 256  ;;  %s1833_s4 = scalar_lea.hbm %s2753_s2, 1536 }
  0x5a   : > { %p2302_p9 = pnand %p2812_p12, %p2240_p13  ;;  %p1829_p3 = scmp.ne.s32.totalorder %s2185_s10, %s1828_s13 }
  0x5b   : > { %p1834_p7 = scmp.lt.u32.totalorder %s2185_s10, %s2753_s2  ;;  %p1835_p5 = scmp.lt.u32.totalorder %s1833_s4, %s1828_s13 }
  0x5c   : > { %p1831_p1 = pnand %p1829_p3, %p1800_p10  ;;  %p1837_p13 = scmp.lt.u32.totalorder %s1828_s13, %s2185_s10 }
  0x5d   : > { %p1836_p11 = por %p1835_p5, %p1834_p7 }
  0x5e   : > { %p1832_p2 = pneg %p1831_p1 }
  0x5f   : > { %p1838_p12 = por %p1837_p13, %p1836_p11 }
  0x61   : > { %p1839_p0 = pnand %p1838_p12, %p1832_p2 }
  0x63   : > { %1842 = shalt.err (!%p1839_p0)
}
  0x64   : > { %s1843_s16 = scalar_lea.vmem %s2220_s19, 256  ;;  %s2035_s7 = smov [#allocation11]  }
  0x65   : > { %p1844_p3 = scmp.ne.s32.totalorder %s2220_s19, %s1843_s16  ;;  %s1848_s8 = sshll.u32 %s2035_s7, 4  ;;  %s1849_s8 = int_to_ptr.vmem [resolvable:$false] %s1848_s8 }
  0x66   : > { %s1850_s9 = scalar_lea.vmem %s1849_s8, 512  ;;  %p1851_p6 = scmp.lt.s32.totalorder %s2220_s19, %s1849_s8 }
  0x67   : > { %p1846_p1 = pnand %p1844_p3, %p1800_p10  ;;  %p1852_p7 = scmp.lt.s32.totalorder %s1850_s9, %s1843_s16 }
  0x69   : > { %p1847_p4 = pneg %p1846_p1  ;;  %p1853_p5 = por %p1852_p7, %p1851_p6 }
  0x6b   : > { %p1854_p11 = pnand %p1853_p5, %p1847_p4 }
  0x6d   : > { %1857 = shalt.err (!%p1854_p11)
}
  0x6e   : > { %s2814_s28 = smov 8   ;;  %s2815_s29 = smov 128  }
  0x6f   : > { %1607 = dma.hbm_to_vmem [thread:$0]  (!%p2173_p8), %s2185_s10, 256, %s2220_s19, %s2187_s18, %s2815_s29, %s2815_s29, %s2814_s28  }
  0x70   : > { %s2816_s5 = sand.u32 1, %s2002_s17   ;;  %s1858_s1 = scalar_lea.hbm %s2296_s3, 256 }
  0x71   : > { %s2335_s13 = scalar_lea.sflag [#allocation7], %s2816_s5  ;;  %p1859_p10 = scmp.ne.s32.totalorder %s2296_s3, %s1858_s1 }
  0x72   : > { %p1860_p6 = pneg %p2302_p9  ;;  %s1863_s4 = scalar_lea.hbm %s2751_s0, 1024 }
  0x73   : > { %p1864_p2 = scmp.lt.u32.totalorder %s2296_s3, %s2751_s0  ;;  %p1865_p8 = scmp.lt.u32.totalorder %s1863_s4, %s1858_s1 }
  0x74   : > { %p1861_p4 = pnand %p1860_p6, %p1859_p10  ;;  %p1867_p12 = scmp.lt.u32.totalorder %s1858_s1, %s2296_s3 }
  0x75   : > { %p1866_p13 = por %p1865_p8, %p1864_p2 }
  0x76   : > { %p1862_p0 = pneg %p1861_p4 }
  0x77   : > { %p1868_p3 = por %p1867_p12, %p1866_p13 }
  0x79   : > { %p1869_p1 = pnand %p1868_p3, %p1862_p0 }
  0x7b   : > { %1872 = shalt.err (!%p1869_p1)
}
  0x7c   : > { %s1873_s18 = scalar_lea.vmem %s2291_s27, 256  ;;  %s2036_s10 = smov [#allocation6]  }
  0x7d   : > { %p1874_p7 = scmp.ne.s32.totalorder %s2291_s27, %s1873_s18  ;;  %s1878_s19 = sshll.u32 %s2036_s10, 4  ;;  %s1879_s19 = int_to_ptr.vmem [resolvable:$false] %s1878_s19 }
  0x7e   : > { %s1880_s16 = scalar_lea.vmem %s1879_s19, 512  ;;  %p1881_p10 = scmp.lt.s32.totalorder %s2291_s27, %s1879_s19 }
  0x7f   : > { %p1876_p5 = pnand %p1874_p7, %p1860_p6  ;;  %p1882_p4 = scmp.lt.s32.totalorder %s1880_s16, %s1873_s18 }
  0x81   : > { %p1877_p11 = pneg %p1876_p5  ;;  %p1883_p2 = por %p1882_p4, %p1881_p10 }
  0x83   : > { %p1884_p8 = pnand %p1883_p2, %p1877_p11 }
  0x85   : > { %1887 = shalt.err (!%p1884_p8)
}
  0x86   : > { %1601 = dma.hbm_to_vmem [thread:$0]  (!%p2302_p9), %s2296_s3, 256, %s2291_s27, %s2335_s13, %s2815_s29, %s2815_s29, %s2814_s28  }
  0x87   : > { %p2817_p6 = scmp.ne.s32.totalorder %s2797_s20, 0 }
  0x88   : > { %s2818_s7 = sld [smem:[#allocation18_spill]] (!%p2817_p6)  ;;  %s2819_s8 = sld [smem:[#allocation25_spill]] (!%p2817_p6) }
  0x89   : > { %242 = sbr.rel (%p2817_p6) target bundleno = 2626 (0xa42), region = 32 }
  0x8e   : > { %s2369_s9 = sand.u32 (!%p2817_p6), 1, %s2818_s7   ;;  %p2820_p0 = scmp.ne.s32.totalorder (!%p2817_p6), %s2819_s8, 0 }
  0x8f   : > { %s1455_s5 = sshll.u32 (!%p2817_p6), %s2369_s9, 4  ;;  %s245_s1 = scalar_lea.sflag (!%p2817_p6), [#allocation7], %s2369_s9 }
  0x90   : > { %s2373_s12 = scalar_lea.vmem [#allocation6], %s1455_s5 }
  0x91   : > { %1969 = dma.done.wait (%p2820_p0), %s245_s1, 256  }
  0x92   : > { %1971 = vsyncadd (%p2820_p0), %s245_s1, 4294967040  ;;  %s2821_s30 = sld [smem:[#allocation23_spill]]  ;;  %s2822_s27 = sld [smem:[#allocation16_spill]] }
  0x93   : > { %s2823_s3 = sld [smem:[#allocation24_spill]] }
  0x98   : > { %s253_s20 = sand.u32 1, %s2821_s30   ;;  %s255_s28 = sand.u32 1, %s2822_s27  }
  0x99   : > { %s2381_s29 = sshll.u32 %s255_s28, 4  ;;  %s254_s13 = scalar_lea.sflag [#allocation10], %s253_s20 }
  0x9a   : > { %s257_s22 = scalar_lea.vmem [#allocation9], %s2381_s29  ;;  %p2824_p9 = scmp.ne.s32.totalorder %s2823_s3, 0 }
  0x9c   : > { %1973 = dma.done.wait (%p2824_p9), %s254_s13, 512  }
  0x9d   : > { %1975 = vsyncadd (%p2824_p9), %s254_s13, 4294966784  ;;  %s266_s4 = scalar_lea.vmem [#allocation11], %s2381_s29  ;;  %s2389_s11 = scalar_lea.vmem [#allocation12], %s1455_s5 }
  0x9e   : > { %s2825_s6 = sld [smem:[#allocation19_spill]] }
  0xa4   : > { %p1459_p13 = scmp.ne.s32.totalorder %s2825_s6, 0 }
  0xa5   : > { %v308_v0 = vld [vmem:[%s2373_s12] sm:$0xff] (!%p1459_p13)  ;;  %v309_v1 = vld [vmem:[%s2373_s12 + $0x8] sm:$0xff] (!%p1459_p13)  ;;  %v2037_v4 = vmov (!%p1459_p13), -2.3819763e+38   ;;  %v2038_v5 = vmov (!%p1459_p13), 0.0  }
  0xa6   : > { %307 = sbr.rel (%p1459_p13) target bundleno = 177 (0xb1), region = 48  ;;  %v310_v2 = vmul.f32 (!%p1459_p13), 0.17677669, %v308_v0  ;;  %v311_v3 = vmul.f32 (!%p1459_p13), 0.17677669, %v309_v1  ;;  %314 = vst [vmem:[#allocation3] sm:$0xff] (!%p1459_p13), %v2037_v4 }
  0xa7   : > { %315 = vst [vmem:[#allocation3 + $0x8] sm:$0xff] (!%p1459_p13), %v2037_v4  ;;  %316 = vst [vmem:[#allocation3 + $0x10] sm:$0xff] (!%p1459_p13), %v2037_v4 }
  0xa8   : > { %317 = vst [vmem:[#allocation3 + $0x18] sm:$0xff] (!%p1459_p13), %v2037_v4  ;;  %318 = vst [vmem:[#allocation3 + $0x20] sm:$0xff] (!%p1459_p13), %v2037_v4 }
  0xa9   : > { %319 = vst [vmem:[#allocation3 + $0x28] sm:$0xff] (!%p1459_p13), %v2037_v4  ;;  %320 = vst [vmem:[#allocation3 + $0x30] sm:$0xff] (!%p1459_p13), %v2037_v4 }
  0xaa   : > { %321 = vst [vmem:[#allocation3 + $0x38] sm:$0xff] (!%p1459_p13), %v2037_v4  ;;  %322 = vst [vmem:[#allocation4] sm:$0xff] (!%p1459_p13), %v2038_v5 }
  0xab   : > { %323 = vst [vmem:[#allocation4 + $0x8] sm:$0xff] (!%p1459_p13), %v2038_v5  ;;  %324 = vst [vmem:[#allocation4 + $0x10] sm:$0xff] (!%p1459_p13), %v2038_v5 }
  0xac   : > { %325 = vst [vmem:[#allocation4 + $0x18] sm:$0xff] (!%p1459_p13), %v2038_v5  ;;  %326 = vst [vmem:[#allocation4 + $0x20] sm:$0xff] (!%p1459_p13), %v2038_v5 }
  0xad   : > { %327 = vst [vmem:[#allocation4 + $0x28] sm:$0xff] %v2038_v5  ;;  %328 = vst [vmem:[#allocation4 + $0x30] sm:$0xff] %v2038_v5 }
  0xae   : > { %329 = vst [vmem:[#allocation4 + $0x38] sm:$0xff] %v2038_v5  ;;  %330 = vst [vmem:[#allocation5] sm:$0xff] %v2038_v5 }
  0xaf   : > { %331 = vst [vmem:[#allocation5 + $0x8] sm:$0xff] %v2038_v5  ;;  %312 = vst [vmem:[#allocation2] sm:$0xff] %v310_v2 }
  0xb0   : > { %313 = vst [vmem:[#allocation2 + $0x8] sm:$0xff] %v311_v3 }
  0xb1 PF: > { %s2826_s18 = sld [smem:[#allocation19_spill]]  ;;  %v334_v6 = vld [vmem:[%s257_s22] sm:$0xff]  ;;  %v335_v7 = vld [vmem:[%s257_s22 + $0x8] sm:$0xff]  ;;  %vm346_vm0 = vcmask 261120   ;;  %v340_v12 = vlaneseq  ;;  %vm440_vm3 = vcmask 130048   ;;  %v2039_v22 = vmov 0  }
  0xb2   : > { %v1564_v9 = vpack.c.bf16 %v335_v7, %v334_v6  ;;  %vm2402_vm1 = vmpackc.low %vm346_vm0, %vm346_vm0  ;;  %1731 = vset.pattern.permute.xlu1 %v2039_v22  ;;  %1737 = vset.pattern.permute.xlu0 %v2039_v22  ;;  %v2426_v23 = vpack.i.bf16 %v335_v7, %v334_v6  ;;  %s2040_s19 = smov 96   ;;  %v2430_v24 = vld [vmem:[#allocation3] sm:$0xff]  ;;  %v2435_v27 = vld [vmem:[#allocation3 + $0x8] sm:$0xff]  ;;  %v2041_v35 = vmov 0.0   ;;  %vm2042_vm4 = vmmov 0   ;;  %s2043_s16 = smov 64  }
  0xb3   : > { %v341_v13 = vand.u32 127, %v340_v12  ;;  %v336_v32 = vld [vmem:[%s266_s4] sm:$0xff]  ;;  %v337_v33 = vld [vmem:[%s266_s4 + $0x8] sm:$0xff]  ;;  %1519 = vmatprep.subr.bf16.mxu1 %v2041_v35  ;;  %1521 = vmatprep.mubr.msk.bf16.mxu1 %vm2042_vm4, %v2041_v35  ;;  %s2044_s7 = smov 32   ;;  %vm1189_vm5 = vcmask 523264   ;;  %vm1192_vm6 = vcmask 785408  }
  0xb4   : > { %1566 = vmatprep.subr.msk.bf16.mxu0 %vm2402_vm1, %v1564_v9  ;;  %v2455_v36 = vpack.c.bf16 %v337_v33, %v336_v32  ;;  %v2491_v61 = vld [vmem:[#allocation3 + $0x18] sm:$0xff]  ;;  %v2493_v62 = vld [vmem:[#allocation3 + $0x10] sm:$0xff] }
  0xb5   : > { %1569 = vmatpush3.bf16.xpose.msk.msra.mxu0 %vm2402_vm1, %v1564_v9 }
  0xb6   : > { %v2398_v8 = vld [vmem:[#allocation2] sm:$0xff]  ;;  %1532 = vmatprep.subr.bf16.mxu0 %v2041_v35  ;;  %1520 = vmatpush3.bf16.msra.mxu1 %v2455_v36 }
  0xb7   : > { %1516 = vmatprep.mubr.msk.f32.mxu0 %vm346_vm0, %v2398_v8  ;;  %v2412_v11 = vld [vmem:[#allocation2 + $0x8] sm:$0xff]  ;;  %s1460_s10 = sshll.u32 %s2826_s18, 4  ;;  %p1481_p12 = scmp.ne.s32.totalorder %s2826_s18, 2 }
  0xb8   : > { %v343_v14 = vstv %s1460_s10 }
  0xb9   : > { %v2417_v15 = vadd.s32 %v343_v14, %v341_v13 }
  0xbb   : > { %vm345_vm2 = vcmp.lt.s32.totalorder %v2417_v15, 40 }
  0xbc   : > { %1517 = vmatmul.mubr.msk.f32.vlgmr.msra.gmra.mrb[0].mxu0 %vm346_vm0, %v2412_v11 }
  0xbd   : > { %1534 = vmatprep.mubr.msk.bf16.mxu0 %vm2042_vm4, %v2041_v35 }
 0x18f   : > { %v1518_v16 = vpop.f32.mrb[0].mxu0 }
 0x190   : > { %v425_v17 = vpop.f32.mrb[1].mxu0  ;;  %v437_v20 = vsel %vm345_vm2, %v1518_v16, -2.3819763e+38 }
 0x191   : > { %v436_v18 = vsel %vm345_vm2, %v425_v17, -2.3819763e+38  ;;  %v444_v21 = vsel %vm440_vm3, %v437_v20, -inf }
 0x192   : > { %v441_v19 = vsel %vm440_vm3, %v436_v18, -inf }
 0x193   : > { %442 = vmax.xlane.f32.xlu0 %v441_v19 }
 0x197   : > { %445 = vmax.xlane.f32.xlu0 %v444_v21 }
 0x1ad   : > { %1733 = vrot.lane.b32.xlu0 %v2426_v23, %s2040_s19 }
 0x220   : > { %v443_v25 = vpop.xlane.xlu0 %442 }
 0x221   : > { %v2433_v26 = vmax.f32 %v2430_v24, %v443_v25 }
 0x223   : > { %v449_v28 = vsub.f32 %v2430_v24, %v2433_v26  ;;  %495 = vst [vmem:[#allocation3] sm:$0xff] %v2433_v26  ;;  %457 = vperm.xlu1 %1731, %v2433_v26  }
 0x224   : > { %v446_v29 = vpop.xlane.xlu0 %445 }
 0x225   : > { %v2442_v30 = vmax.f32 %v2435_v27, %v446_v29 }
 0x227   : > { %v450_v31 = vsub.f32 %v2435_v27, %v2442_v30  ;;  %496 = vst [vmem:[#allocation3 + $0x8] sm:$0xff] %v2442_v30  ;;  %462 = vperm.xlu1 %1731, %v2442_v30  }
 0x228   : > { %v1734_v34 = vpop.permute.xlu0 %1733 }
 0x229   : > { %v1736_v37 = vunpack.i.h.bf16 %v1734_v34  ;;  %v1735_v38 = vunpack.i.l.bf16 %v1734_v34 }
 0x22b   : > { %547 = vrot.lane.b32.xlu1 %v2398_v8, %s2040_s19  ;;  %v1570_v39 = vpack.c.bf16 %v1736_v37, %v1735_v38 }
 0x22d   : > { %1572 = vmatprep.subr.msk.bf16.mxu1 %vm2402_vm1, %v1570_v39 }
 0x22f   : > { %549 = vrot.lane.b32.xlu1 %v2412_v11, %s2040_s19 }
 0x2a2   : > { %v458_v40 = vpop.permute.xlu1 %457 }
 0x2a3   : > { %v465_v41 = vsub.f32 %v436_v18, %v458_v40 }
 0x2a5   : > { %v467_v42 = vmul.f32 1.442695, %v465_v41 }
 0x2a6   : > { %v463_v43 = vpop.permute.xlu1 %462 }
 0x2a7   : > { %v466_v44 = vsub.f32 %v437_v20, %v463_v43  ;;  %1748 = vpow2.f32 %v467_v42 }
 0x2a9   : > { %v469_v45 = vmul.f32 1.442695, %v466_v44  ;;  %v2545_v44 = vld [vmem:[#allocation3 + $0x20] sm:$0xff] }
 0x2aa   : > { %v548_v49 = vpop.permute.xlu1 %547 }
 0x2ab   : > { %1750 = vpow2.f32 %v469_v45 }
 0x2ae   : > { %v550_v50 = vpop.permute.xlu1 %549 }
 0x2b1   : > { %v2467_v46 = vpop.eup %1748 }
 0x2b5   : > { %v2469_v47 = vpop.eup %1750 }
 0x2b6   : > { %v497_v48 = vpack.c.bf16 %v2469_v47, %v2467_v46 }
 0x2b8   : > { %1522 = vmatmul.mubr.msk.bf16.vlgmr.msra.gmra.mrb[0].mxu1 %vm440_vm3, %v497_v48 }
 0x2b9   : > { %1575 = vmatpush3.bf16.xpose.msk.msra.mxu1 %vm2402_vm1, %v1570_v39  ;;  %1529 = vmatprep.mubr.msk.f32.mxu1 %vm346_vm0, %v548_v49 }
 0x2ba   : > { %1545 = vmatprep.subr.bf16.mxu1 %v2041_v35 }
 0x2c0   : > { %1530 = vmatmul.mubr.msk.f32.vlgmr.msra.gmra.mrb[4].mxu1 %vm346_vm0, %v550_v50 }
 0x2c1   : > { %1547 = vmatprep.mubr.msk.bf16.mxu1 %vm2042_vm4, %v2041_v35 }
 0x38b   : > { %v2481_v51 = vpop.f32.mrb[0].mxu1 }
 0x38c   : > { %v1523_v52 = vpop.f32.mrb[1].mxu1 }
 0x38d   : > { %v2483_v53 = vpop.f32.mrb[2].mxu1 }
 0x38e   : > { %v1524_v54 = vpop.f32.mrb[3].mxu1 }
 0x393   : > { %v1531_v55 = vpop.f32.mrb[4].mxu1 }
 0x394   : > { %v639_v56 = vsel %vm345_vm2, %v1531_v55, -2.3819763e+38  ;;  %v629_v57 = vpop.f32.mrb[5].mxu1 }
 0x395   : > { %v638_v58 = vsel %vm345_vm2, %v629_v57, -2.3819763e+38  ;;  %v646_v59 = vsel %vm440_vm3, %v639_v56, -inf }
 0x396   : > { %647 = vmax.xlane.f32.xlu0 %v646_v59  ;;  %v643_v60 = vsel %vm440_vm3, %v638_v58, -inf }
 0x397   : > { %644 = vmax.xlane.f32.xlu1 %v643_v60 }
 0x423   : > { %v648_v63 = vpop.xlane.xlu0 %647 }
 0x424   : > { %v2496_v0 = vmax.f32 %v2491_v61, %v648_v63  ;;  %v645_v1 = vpop.xlane.xlu1 %644 }
 0x425   : > { %v2499_v2 = vmax.f32 %v2493_v62, %v645_v1 }
 0x426   : > { %v652_v3 = vsub.f32 %v2491_v61, %v2496_v0  ;;  %699 = vst [vmem:[#allocation3 + $0x18] sm:$0xff] %v2496_v0  ;;  %664 = vperm.xlu0 %1737, %v2496_v0  }
 0x427   : > { %v651_v4 = vsub.f32 %v2493_v62, %v2499_v2  ;;  %698 = vst [vmem:[#allocation3 + $0x10] sm:$0xff] %v2499_v2  ;;  %659 = vperm.xlu1 %1731, %v2499_v2  }
 0x42b   : > { %702 = vrot.lane.b32.xlu1 %v2455_v36, %s2040_s19 }
 0x42f   : > { %1739 = vrot.lane.b32.xlu1 %v2426_v23, %s2043_s16 }
 0x433   : > { %761 = vrot.lane.b32.xlu1 %v2398_v8, %s2043_s16 }
 0x437   : > { %763 = vrot.lane.b32.xlu1 %v2412_v11, %s2043_s16 }
 0x4a5   : > { %v665_v5 = vpop.permute.xlu0 %664 }
 0x4a6   : > { %v668_v6 = vsub.f32 %v639_v56, %v665_v5  ;;  %v660_v7 = vpop.permute.xlu1 %659 }
 0x4a7   : > { %v667_v9 = vsub.f32 %v638_v58, %v660_v7 }
 0x4a8   : > { %v671_v12 = vmul.f32 1.442695, %v668_v6 }
 0x4a9   : > { %v669_v13 = vmul.f32 1.442695, %v667_v9 }
 0x4aa   : > { %1752 = vpow2.f32 %v671_v12  ;;  %v703_v14 = vpop.permute.xlu1 %702 }
 0x4ab   : > { %1754 = vpow2.f32 %v669_v13  ;;  %1533 = vmatpush3.bf16.msra.mxu0 %v703_v14 }
 0x4ae   : > { %v1740_v16 = vpop.permute.xlu1 %1739 }
 0x4af   : > { %v1742_v17 = vunpack.i.h.bf16 %v1740_v16  ;;  %v1741_v18 = vunpack.i.l.bf16 %v1740_v16 }
 0x4b1   : > { %v1576_v19 = vpack.c.bf16 %v1742_v17, %v1741_v18 }
 0x4b2   : > { %v762_v25 = vpop.permute.xlu1 %761 }
 0x4b3   : > { %1578 = vmatprep.subr.msk.bf16.mxu0 %vm2402_vm1, %v1576_v19 }
 0x4b4   : > { %v2519_v20 = vpop.eup %1752 }
 0x4b5   : > { %v2521_v21 = vpop.eup %1754 }
 0x4b6   : > { %v700_v22 = vpack.c.bf16 %v2519_v20, %v2521_v21  ;;  %v764_v29 = vpop.permute.xlu1 %763 }
 0x4b8   : > { %1535 = vmatmul.mubr.msk.bf16.vlgmr.msra.gmra.mrb[4].mxu0 %vm440_vm3, %v700_v22 }
 0x4b9   : > { %1581 = vmatpush3.bf16.xpose.msk.msra.mxu0 %vm2402_vm1, %v1576_v19  ;;  %1542 = vmatprep.mubr.msk.f32.mxu0 %vm346_vm0, %v762_v25 }
 0x4ba   : > { %1558 = vmatprep.subr.bf16.mxu0 %v2041_v35 }
 0x4c0   : > { %1543 = vmatmul.mubr.msk.f32.vlgmr.msra.gmra.mrb[2].mxu0 %vm346_vm0, %v764_v29 }
 0x4c1   : > { %1560 = vmatprep.mubr.msk.bf16.mxu0 %vm2042_vm4, %v2041_v35  ;;  %v2543_v35 = vld [vmem:[#allocation3 + $0x28] sm:$0xff] }
 0x58b   : > { %v2533_v32 = vpop.f32.mrb[4].mxu0 }
 0x58c   : > { %v1536_v33 = vpop.f32.mrb[5].mxu0 }
 0x58d   : > { %v2535_v34 = vpop.f32.mrb[6].mxu0  ;;  %v1069_v33 = vld [vmem:[#allocation3 + $0x38] sm:$0xff] }
 0x58e   : > { %v1537_v37 = vpop.f32.mrb[7].mxu0 }
 0x58f   : > { %v1068_v37 = vld [vmem:[#allocation3 + $0x30] sm:$0xff] }
 0x593   : > { %v1544_v38 = vpop.f32.mrb[2].mxu0 }
 0x594   : > { %v853_v39 = vsel %vm345_vm2, %v1544_v38, -2.3819763e+38  ;;  %v843_v40 = vpop.f32.mrb[3].mxu0 }
 0x595   : > { %v852_v41 = vsel %vm345_vm2, %v843_v40, -2.3819763e+38  ;;  %v860_v42 = vsel %vm440_vm3, %v853_v39, -inf }
 0x596   : > { %861 = vmax.xlane.f32.xlu0 %v860_v42  ;;  %v857_v43 = vsel %vm440_vm3, %v852_v41, -inf }
 0x597   : > { %858 = vmax.xlane.f32.xlu1 %v857_v43  ;;  %v471_v43 = vsel %vm440_vm3, %v2467_v46, 0.0  ;;  %v451_v46 = vmul.f32 1.442695, %v449_v28 }
 0x623   : > { %v862_v45 = vpop.xlane.xlu0 %861 }
 0x624   : > { %v2548_v48 = vmax.f32 %v2543_v35, %v862_v45  ;;  %v859_v49 = vpop.xlane.xlu1 %858  ;;  %v673_v45 = vsel %vm440_vm3, %v2521_v21, 0.0  ;;  %v653_v21 = vmul.f32 1.442695, %v651_v4 }
 0x625   : > { %v2551_v50 = vmax.f32 %v2545_v44, %v859_v49  ;;  %v474_v49 = vsel %vm440_vm3, %v2469_v47, 0.0 }
 0x626   : > { %v866_v52 = vsub.f32 %v2543_v35, %v2548_v48  ;;  %913 = vst [vmem:[#allocation3 + $0x28] sm:$0xff] %v2548_v48  ;;  %878 = vperm.xlu0 %1737, %v2548_v48  }
 0x627   : > { %v865_v54 = vsub.f32 %v2545_v44, %v2551_v50  ;;  %912 = vst [vmem:[#allocation3 + $0x20] sm:$0xff] %v2551_v50  ;;  %873 = vperm.xlu1 %1731, %v2551_v50  }
 0x628   : > { %v869_v26 = vmul.f32 1.442695, %v866_v52 }
 0x629   : > { %v867_v24 = vmul.f32 1.442695, %v865_v54 }
 0x62b   : > { %915 = vrot.lane.b32.xlu1 %v2455_v36, %s2043_s16 }
 0x62f   : > { %1744 = vrot.lane.b32.xlu1 %v2426_v23, %s2044_s7 }
 0x633   : > { %974 = vrot.lane.b32.xlu1 %v2398_v8, %s2044_s7 }
 0x637   : > { %976 = vrot.lane.b32.xlu1 %v2412_v11, %s2044_s7 }
 0x6a5   : > { %v879_v55 = vpop.permute.xlu0 %878 }
 0x6a6   : > { %v882_v56 = vsub.f32 %v853_v39, %v879_v55  ;;  %v874_v57 = vpop.permute.xlu1 %873  ;;  %v676_v55 = vsel %vm440_vm3, %v2519_v20, 0.0  ;;  %v453_v20 = vmul.f32 1.442695, %v450_v31 }
 0x6a7   : > { %v881_v58 = vsub.f32 %v852_v41, %v874_v57 }
 0x6a8   : > { %v885_v59 = vmul.f32 1.442695, %v882_v56 }
 0x6a9   : > { %v883_v60 = vmul.f32 1.442695, %v881_v58 }
 0x6aa   : > { %1756 = vpow2.f32 %v885_v59  ;;  %v916_v63 = vpop.permute.xlu1 %915 }
 0x6ab   : > { %1758 = vpow2.f32 %v883_v60  ;;  %1546 = vmatpush3.bf16.msra.mxu1 %v916_v63 }
 0x6ac   : > { %1760 = vpow2.f32 %v451_v46 }
 0x6ad   : > { %1762 = vpow2.f32 %v453_v20 }
 0x6ae   : > { %v1745_v1 = vpop.permute.xlu1 %1744  ;;  %1764 = vpow2.f32 %v653_v21 }
 0x6af   : > { %v1747_v5 = vunpack.i.h.bf16 %v1745_v1  ;;  %v1746_v6 = vunpack.i.l.bf16 %v1745_v1 }
 0x6b1   : > { %v1582_v23 = vpack.c.bf16 %v1747_v5, %v1746_v6 }
 0x6b2   : > { %v975_v9 = vpop.permute.xlu1 %974 }
 0x6b3   : > { %1584 = vmatprep.subr.msk.bf16.mxu1 %vm2402_vm1, %v1582_v23 }
 0x6b4   : > { %v1757_v8 = vpop.eup %1756 }
 0x6b5   : > { %v1759_v7 = vpop.eup %1758  ;;  %v890_v47 = vsel %vm440_vm3, %v1757_v8, 0.0 }
 0x6b6   : > { %v914_v11 = vpack.c.bf16 %v1757_v8, %v1759_v7  ;;  %v977_v12 = vpop.permute.xlu1 %976  ;;  %v1761_v28 = vpop.eup %1760 }
 0x6b7   : > { %v1763_v31 = vpop.eup %1762 }
 0x6b8   : > { %1548 = vmatmul.mubr.msk.bf16.vlgmr.msra.gmra.mrb[8].mxu1 %vm440_vm3, %v914_v11  ;;  %v1765_v61 = vpop.eup %1764  ;;  %v2635_v11 = vld [vmem:[#allocation5] sm:$0xff] }
 0x6b9   : > { %1587 = vmatpush3.bf16.xpose.msk.msra.mxu1 %vm2402_vm1, %v1582_v23  ;;  %1555 = vmatprep.mubr.msk.f32.mxu1 %vm346_vm0, %v975_v9  ;;  %v477_v9 = vld [vmem:[#allocation4] sm:$0xff] }
 0x6c0   : > { %1556 = vmatmul.mubr.msk.f32.vlgmr.msra.gmra.mrb[6].mxu1 %vm346_vm0, %v977_v12 }
 0x78b   : > { %v2576_v13 = vpop.f32.mrb[8].mxu1 }
 0x78c   : > { %v1549_v14 = vpop.f32.mrb[9].mxu1 }
 0x78d   : > { %v2578_v16 = vpop.f32.mrb[10].mxu1 }
 0x78e   : > { %v1550_v17 = vpop.f32.mrb[11].mxu1 }
 0x78f   : > { %v2638_v17 = vld [vmem:[#allocation5 + $0x8] sm:$0xff] }
 0x793   : > { %v1557_v18 = vpop.f32.mrb[6].mxu1 }
 0x794   : > { %v2582_v19 = vsel %vm345_vm2, %v1557_v18, -2.3819763e+38  ;;  %v1056_v22 = vpop.f32.mrb[7].mxu1  ;;  %v478_v18 = vld [vmem:[#allocation4 + $0x8] sm:$0xff] }
 0x795   : > { %v2586_v10 = vsel %vm345_vm2, %v1056_v22, -2.3819763e+38  ;;  %v1073_v25 = vsel %vm440_vm3, %v2582_v19, -inf }
 0x796   : > { %1074 = vmax.xlane.f32.xlu0 %v1073_v25  ;;  %v1070_v29 = vsel %vm440_vm3, %v2586_v10, -inf }
 0x797   : > { %1071 = vmax.xlane.f32.xlu1 %v1070_v29 }
 0x823   : > { %v1075_v38 = vpop.xlane.xlu0 %1074 }
 0x824   : > { %v1077_v39 = vmax.f32 %v1069_v33, %v1075_v38  ;;  %v1072_v40 = vpop.xlane.xlu1 %1071 }
 0x825   : > { %v1076_v41 = vmax.f32 %v1068_v37, %v1072_v40  ;;  %v681_v40 = vld [vmem:[#allocation4 + $0x18] sm:$0xff] }
 0x826   : > { %v1079_v42 = vsub.f32 %v1069_v33, %v1077_v39  ;;  %1126 = vst [vmem:[#allocation3 + $0x38] sm:$0xff] %v1077_v39  ;;  %1091 = vperm.xlu1 %1731, %v1077_v39  }
 0x827   : > { %v1078_v15 = vsub.f32 %v1068_v37, %v1076_v41  ;;  %1125 = vst [vmem:[#allocation3 + $0x30] sm:$0xff] %v1076_v41  ;;  %1086 = vperm.xlu0 %1737, %v1076_v41   ;;  %v894_v41 = vld [vmem:[#allocation4 + $0x20] sm:$0xff] }
 0x828   : > { %v1082_v27 = vmul.f32 1.442695, %v1079_v42 }
 0x829   : > { %v1080_v30 = vmul.f32 1.442695, %v1078_v15 }
 0x82a   : > { %1128 = vrot.lane.b32.xlu1 %v2455_v36, %s2044_s7  ;;  %v887_v36 = vsel %vm440_vm3, %v1759_v7, 0.0 }
 0x846   : > { %472 = vadd.xlane.f32.xlu0 %v471_v43 }
 0x84a   : > { %674 = vadd.xlane.f32.xlu0 %v673_v45 }
 0x84e   : > { %475 = vadd.xlane.f32.xlu1 %v474_v49 }
 0x852   : > { %677 = vadd.xlane.f32.xlu1 %v676_v55 }
 0x860   : > { %753 = vrot.lane.b32.xlu0 %v2533_v32, %s2044_s7  ;;  %v655_v32 = vmul.f32 1.442695, %v652_v3 }
 0x862   : > { %1766 = vpow2.f32 %v655_v32 }
 0x863   : > { %755 = vrot.lane.b32.xlu1 %v2535_v34, %s2044_s7  ;;  %1768 = vpow2.f32 %v867_v24 }
 0x864   : > { %1770 = vpow2.f32 %v869_v26 }
 0x865   : > { %1772 = vpow2.f32 %v1082_v27 }
 0x866   : > { %1774 = vpow2.f32 %v1080_v30 }
 0x86c   : > { %v1767_v62 = vpop.eup %1766 }
 0x86d   : > { %v1769_v0 = vpop.eup %1768 }
 0x86e   : > { %v1771_v2 = vpop.eup %1770 }
 0x86f   : > { %v1773_v3 = vpop.eup %1772 }
 0x870   : > { %v1775_v4 = vpop.eup %1774 }
 0x87f   : > { %888 = vadd.xlane.f32.xlu0 %v887_v36 }
 0x887   : > { %891 = vadd.xlane.f32.xlu1 %v890_v47  ;;  %v895_v47 = vld [vmem:[#allocation4 + $0x28] sm:$0xff] }
 0x895   : > { %481 = vperm.xlu0 %1737, %v1761_v28  }
 0x898   : > { %486 = vperm.xlu1 %1731, %v1763_v31  }
 0x899   : > { %684 = vperm.xlu0 %1737, %v1765_v61  }
 0x89c   : > { %689 = vperm.xlu1 %1731, %v1767_v62  }
 0x89d   : > { %898 = vperm.xlu0 %1737, %v1769_v0  }
 0x8a0   : > { %903 = vperm.xlu1 %1731, %v1771_v2  }
 0x8a1   : > { %1116 = vperm.xlu0 %1737, %v1773_v3  }
 0x8a4   : > { %968 = vrot.lane.b32.xlu1 %v2578_v16, %s2043_s16 }
 0x8a5   : > { %v1092_v34 = vpop.permute.xlu1 %1091  ;;  %1111 = vperm.xlu0 %1737, %v1775_v4  }
 0x8a6   : > { %v1095_v35 = vsub.f32 %v2582_v19, %v1092_v34  ;;  %v1087_v44 = vpop.permute.xlu0 %1086  ;;  %v680_v19 = vld [vmem:[#allocation4 + $0x10] sm:$0xff] }
 0x8a7   : > { %v1094_v48 = vsub.f32 %v2586_v10, %v1087_v44  ;;  %v1108_v44 = vld [vmem:[#allocation4 + $0x38] sm:$0xff] }
 0x8a8   : > { %v1098_v50 = vmul.f32 1.442695, %v1095_v35 }
 0x8a9   : > { %v1096_v52 = vmul.f32 1.442695, %v1094_v48  ;;  %966 = vrot.lane.b32.xlu0 %v2576_v13, %s2043_s16  ;;  %v1129_v54 = vpop.permute.xlu1 %1128 }
 0x8aa   : > { %1776 = vpow2.f32 %v1098_v50  ;;  %1559 = vmatpush3.bf16.msra.mxu0 %v1129_v54  ;;  %v1107_v50 = vld [vmem:[#allocation4 + $0x30] sm:$0xff] }
 0x8ab   : > { %1778 = vpow2.f32 %v1096_v52 }
 0x8b4   : > { %v1777_v56 = vpop.eup %1776 }
 0x8b5   : > { %v1779_v57 = vpop.eup %1778  ;;  %v1103_v59 = vsel %vm440_vm3, %v1777_v56, 0.0 }
 0x8b6   : > { %v1127_v58 = vpack.c.bf16 %v1777_v56, %v1779_v57  ;;  %v1100_v60 = vsel %vm440_vm3, %v1779_v57, 0.0 }
 0x8b8   : > { %1561 = vmatmul.mubr.msk.bf16.vlgmr.msra.gmra.mrb[8].mxu0 %vm440_vm3, %v1127_v58 }
 0x8c8   : > { %1104 = vadd.xlane.f32.xlu1 %v1103_v59 }
 0x8cc   : > { %1101 = vadd.xlane.f32.xlu1 %v1100_v60 }
 0x8d3   : > { %v473_v63 = vpop.xlane.xlu0 %472 }
 0x8d7   : > { %v675_v5 = vpop.xlane.xlu0 %674 }
 0x8db   : > { %v476_v1 = vpop.xlane.xlu1 %475  ;;  %v754_v23 = vpop.permute.xlu0 %753 }
 0x8df   : > { %v678_v6 = vpop.xlane.xlu1 %677 }
 0x8e3   : > { %v756_v8 = vpop.permute.xlu1 %755 }
 0x90c   : > { %v889_v7 = vpop.xlane.xlu0 %888 }
 0x914   : > { %v482_v12 = vpop.permute.xlu0 %481  ;;  %v892_v13 = vpop.xlane.xlu1 %891 }
 0x915   : > { %v489_v14 = vmul.f32 %v482_v12, %v477_v9  ;;  %v543_v16 = vmul.f32 %v482_v12, %v2635_v11 }
 0x917   : > { %v491_v22 = vadd.f32 %v489_v14, %v473_v63  ;;  %v545_v10 = vadd.f32 %v543_v16, %v2481_v51 }
 0x918   : > { %v487_v25 = vpop.permute.xlu1 %486  ;;  %v685_v29 = vpop.permute.xlu0 %684 }
 0x919   : > { %493 = vst [vmem:[#allocation4] sm:$0xff] %v491_v22  ;;  %v490_v33 = vmul.f32 %v487_v25, %v478_v18  ;;  %v544_v37 = vmul.f32 %v487_v25, %v2638_v17  ;;  %v692_v38 = vmul.f32 %v685_v29, %v680_v19  ;;  %v749_v39 = vmul.f32 %v685_v29, %v2635_v11 }
 0x91b   : > { %v492_v42 = vadd.f32 %v490_v33, %v476_v1  ;;  %v546_v15 = vadd.f32 %v544_v37, %v2483_v53  ;;  %v694_v43 = vadd.f32 %v692_v38, %v675_v5  ;;  %v759_v45 = vadd.f32 %v754_v23, %v749_v39 }
 0x91c   : > { %v690_v49 = vpop.permute.xlu1 %689  ;;  %v899_v55 = vpop.permute.xlu0 %898 }
 0x91d   : > { %494 = vst [vmem:[#allocation4 + $0x8] sm:$0xff] %v492_v42  ;;  %696 = vst [vmem:[#allocation4 + $0x10] sm:$0xff] %v694_v43  ;;  %v693_v51 = vmul.f32 %v690_v49, %v681_v40  ;;  %v750_v36 = vmul.f32 %v690_v49, %v2638_v17  ;;  %v906_v46 = vmul.f32 %v899_v55, %v894_v41 }
 0x91e   : > { %v1187_v20 = vsel %vm346_vm0, %v545_v10, %v759_v45  ;;  %v962_v2 = vmul.f32 %v899_v55, %v2635_v11 }
 0x91f   : > { %v695_v21 = vadd.f32 %v693_v51, %v678_v6  ;;  %v760_v32 = vadd.f32 %v756_v8, %v750_v36  ;;  %v908_v24 = vadd.f32 %v906_v46, %v889_v7 }
 0x920   : > { %v904_v26 = vpop.permute.xlu1 %903  ;;  %v1117_v27 = vpop.permute.xlu0 %1116  ;;  %v1203_v16 = vld [vmem:[#allocation4] sm:$0xff] (!%p1481_p12) }
 0x921   : > { %697 = vst [vmem:[#allocation4 + $0x18] sm:$0xff] %v695_v21  ;;  %910 = vst [vmem:[#allocation4 + $0x20] sm:$0xff] %v908_v24  ;;  %v907_v53 = vmul.f32 %v904_v26, %v895_v47  ;;  %v1188_v28 = vsel %vm346_vm0, %v546_v15, %v760_v32  ;;  %v963_v31 = vmul.f32 %v904_v26, %v2638_v17 }
 0x922   : > { %v1120_v48 = vmul.f32 %v1117_v27, %v1108_v44  ;;  %v1176_v23 = vmul.f32 %v1117_v27, %v2638_v17 }
 0x923   : > { %v909_v30 = vadd.f32 %v907_v53, %v892_v13 }
 0x924   : > { %v969_v61 = vpop.permute.xlu1 %968  ;;  %v1112_v62 = vpop.permute.xlu0 %1111  ;;  %v1219_v14 = vld [vmem:[#allocation4 + $0x10] sm:$0xff] (!%p1481_p12)  ;;  %v1204_v17 = vld [vmem:[#allocation4 + $0x8] sm:$0xff] (!%p1481_p12) }
 0x925   : > { %911 = vst [vmem:[#allocation4 + $0x28] sm:$0xff] %v909_v30  ;;  %v973_v0 = vadd.f32 %v969_v61, %v963_v31  ;;  %v1119_v56 = vmul.f32 %v1112_v62, %v1107_v50  ;;  %v1175_v5 = vmul.f32 %v1112_v62, %v2635_v11  ;;  %v2045_v11 = vmov (!%p1481_p12), 0  }
 0x926   : > { %1781 = vset.pattern.permute.xlu1 (!%p1481_p12), %v2045_v11  ;;  %1780 = vset.pattern.permute.xlu0 (!%p1481_p12), %v2045_v11  ;;  %1782 = vrcp.f32 (!%p1481_p12), %v1219_v14 }
 0x927   : > { %v1191_v3 = vsel %vm1189_vm5, %v1188_v28, %v973_v0  ;;  %1784 = vrcp.f32 (!%p1481_p12), %v1203_v16  ;;  %v1274_v28 = vld [vmem:[%s2373_s12 + $0x8] sm:$0xff] (!%p1481_p12)  ;;  %v1273_v0 = vld [vmem:[%s2373_s12] sm:$0xff] (!%p1481_p12) }
 0x928   : > { %v967_v4 = vpop.permute.xlu0 %966  ;;  %v1220_v18 = vld [vmem:[#allocation4 + $0x18] sm:$0xff] (!%p1481_p12)  ;;  %v1235_v22 = vld [vmem:[#allocation4 + $0x20] sm:$0xff] (!%p1481_p12) }
 0x929   : > { %v972_v34 = vadd.f32 %v967_v4, %v962_v2  ;;  %1786 = vrcp.f32 (!%p1481_p12), %v1220_v18 }
 0x92a   : > { %1788 = vrcp.f32 (!%p1481_p12), %v1204_v17 }
 0x92b   : > { %v1190_v35 = vsel %vm1189_vm5, %v1187_v20, %v972_v34 }
 0x92c   : > { %v1236_v19 = vld [vmem:[#allocation4 + $0x28] sm:$0xff] (!%p1481_p12) }
 0x92d   : > { %1790 = vrcp.f32 (!%p1481_p12), %v1236_v19 }
 0x92e   : > { %1792 = vrcp.f32 (!%p1481_p12), %v1235_v22 }
 0x930   : > { %v1783_v29 = vpop.eup (!%p1481_p12), %1782 }
 0x931   : > { %v1785_v33 = vpop.eup (!%p1481_p12), %1784 }
 0x933   : > { %v1787_v37 = vpop.eup (!%p1481_p12), %1786 }
 0x934   : > { %v1789_v38 = vpop.eup (!%p1481_p12), %1788 }
 0x937   : > { %v1791_v39 = vpop.eup (!%p1481_p12), %1790 }
 0x938   : > { %v1793_v40 = vpop.eup (!%p1481_p12), %1792 }
 0x955   : > { %v1105_v52 = vpop.xlane.xlu1 %1104 }
 0x956   : > { %v1122_v54 = vadd.f32 %v1120_v48, %v1105_v52 }
 0x958   : > { %1124 = vst [vmem:[#allocation4 + $0x38] sm:$0xff] %v1122_v54 }
 0x959   : > { %v1102_v57 = vpop.xlane.xlu1 %1101 }
 0x95a   : > { %v1121_v58 = vadd.f32 %v1119_v56, %v1102_v57 }
 0x95c   : > { %1123 = vst [vmem:[#allocation4 + $0x30] sm:$0xff] %v1121_v58 }
 0x95f   : > { %v1252_v10 = vld [vmem:[#allocation4 + $0x38] sm:$0xff] (!%p1481_p12) }
 0x960   : > { %1794 = vrcp.f32 (!%p1481_p12), %v1252_v10 }
 0x963   : > { %v1251_v25 = vld [vmem:[#allocation4 + $0x30] sm:$0xff] (!%p1481_p12) }
 0x964   : > { %1796 = vrcp.f32 (!%p1481_p12), %v1251_v25 }
 0x96a   : > { %v1795_v41 = vpop.eup (!%p1481_p12), %1794 }
 0x96e   : > { %v1797_v42 = vpop.eup (!%p1481_p12), %1796 }
 0x98b   : > { %v1168_v59 = vpop.f32.mrb[8].mxu0 }
 0x98c   : > { %v1562_v60 = vpop.f32.mrb[9].mxu0  ;;  %1179 = vrot.lane.b32.xlu0 %v1168_v59, %s2040_s19 }
 0x98d   : > { %v1171_v63 = vpop.f32.mrb[10].mxu0 }
 0x98e   : > { %1181 = vrot.lane.b32.xlu1 %v1171_v63, %s2040_s19  ;;  %v1563_v1 = vpop.f32.mrb[11].mxu0 }
 0x990   : > { %1209 = vperm.xlu0 (!%p1481_p12), %1780, %v1785_v33  }
 0x992   : > { %1225 = vperm.xlu1 (!%p1481_p12), %1781, %v1783_v29  }
 0x994   : > { %1214 = vperm.xlu0 (!%p1481_p12), %1780, %v1789_v38  }
 0x996   : > { %1230 = vperm.xlu1 (!%p1481_p12), %1781, %v1787_v37  }
 0x998   : > { %1241 = vperm.xlu0 (!%p1481_p12), %1780, %v1793_v40  }
 0x99a   : > { %1246 = vperm.xlu1 (!%p1481_p12), %1781, %v1791_v39  }
 0x99c   : > { %1257 = vperm.xlu0 (!%p1481_p12), %1780, %v1797_v42  }
 0x99e   : > { %1262 = vperm.xlu1 (!%p1481_p12), %1781, %v1795_v41  }
 0x9fe   : > { %v1180_v6 = vpop.permute.xlu0 %1179  ;;  %1200 = sbr.rel (%p1481_p12) target bundleno = 2596 (0xa24), region = 52 }
 0x9ff   : > { %v1185_v8 = vadd.f32 %v1180_v6, %v1175_v5 }
 0xa00   : > { %v1182_v7 = vpop.permute.xlu1 %1181 }
 0xa01   : > { %v1193_v9 = vsel %vm1192_vm6, %v1190_v35, %v1185_v8  ;;  %v1186_v12 = vadd.f32 %v1182_v7, %v1176_v23 }
 0xa02   : > { %1195 = vst [vmem:[#allocation5] sm:$0xff] %v1193_v9 }
 0xa03   : > { %v1194_v13 = vsel %vm1192_vm6, %v1191_v3, %v1186_v12 }
 0xa04   : > { %1196 = vst [vmem:[#allocation5 + $0x8] sm:$0xff] %v1194_v13 }
 0xa09   : > { %v1201_v51 = vld [vmem:[#allocation5] sm:$0xff] }
 0xa0b   : > { %v1202_v55 = vld [vmem:[#allocation5 + $0x8] sm:$0xff] }
 0xa0f   : > { %v1210_v43 = vpop.permute.xlu0 %1209 }
 0xa10   : > { %v1217_v32 = vmul.f32 %v1210_v43, %v1201_v51 }
 0xa11   : > { %v1226_v15 = vpop.permute.xlu1 %1225 }
 0xa12   : > { %v1233_v21 = vmul.f32 %v1226_v15, %v1201_v51 }
 0xa13   : > { %v1215_v49 = vpop.permute.xlu0 %1214 }
 0xa14   : > { %v1218_v47 = vmul.f32 %v1215_v49, %v1202_v55  ;;  %v1267_v61 = vsel %vm346_vm0, %v1217_v32, %v1233_v21 }
 0xa15   : > { %v1231_v45 = vpop.permute.xlu1 %1230 }
 0xa16   : > { %v1234_v46 = vmul.f32 %v1231_v45, %v1202_v55 }
 0xa17   : > { %v1242_v20 = vpop.permute.xlu0 %1241 }
 0xa18   : > { %v1249_v26 = vmul.f32 %v1242_v20, %v1201_v51  ;;  %v1268_v53 = vsel %vm346_vm0, %v1218_v47, %v1234_v46 }
 0xa19   : > { %v1247_v36 = vpop.permute.xlu1 %1246 }
 0xa1a   : > { %v1250_v24 = vmul.f32 %v1247_v36, %v1202_v55  ;;  %v1269_v3 = vsel %vm1189_vm5, %v1267_v61, %v1249_v26 }
 0xa1b   : > { %v1258_v31 = vpop.permute.xlu0 %1257 }
 0xa1c   : > { %v1270_v62 = vsel %vm1189_vm5, %v1268_v53, %v1250_v24  ;;  %v1265_v2 = vmul.f32 %v1258_v31, %v1201_v51 }
 0xa1d   : > { %v1263_v27 = vpop.permute.xlu1 %1262 }
 0xa1e   : > { %v1266_v30 = vmul.f32 %v1263_v27, %v1202_v55  ;;  %v1271_v35 = vsel %vm1192_vm6, %v1269_v3, %v1265_v2 }
 0xa1f   : > { %v1275_v44 = vadd.f32 %v1273_v0, %v1271_v35 }
 0xa20   : > { %v1272_v4 = vsel %vm1192_vm6, %v1270_v62, %v1266_v30 }
 0xa21   : > { %v1276_v34 = vadd.f32 %v1274_v28, %v1272_v4  ;;  %1277 = vst [vmem:[%s2389_s11] sm:$0xff] %v1275_v44 }
 0xa23   : > { %1278 = vst [vmem:[%s2389_s11 + $0x8] sm:$0xff] %v1276_v34 }
 0xa24 PF: > { %s2829_s8 = sld [smem:[#allocation20_spill]]  ;;  %s2830_s5 = sld [smem:[#allocation21_spill]] }
 0xa25   : > { %s2831_s1 = sld [smem:[#allocation27_spill]]  ;;  %s1295_s12 = sshll.u32 %s2389_s11, 4  ;;  %s2671_s12 = int_to_ptr.vmem [resolvable:$true] %s1295_s12 }
 0xa26   : > { %s2832_s13 = sld [smem:[#allocation31_spill]]  ;;  %s1280_s6 = scalar_lea.sflag [#allocation8], %s2369_s9 }
 0xa27   : > { %s1888_s18 = scalar_lea.vmem %s2671_s12, 256  ;;  %s2046_s10 = smov [#allocation12]  }
 0xa28   : > { %p1889_p3 = scmp.ne.s32.totalorder %s2671_s12, %s1888_s18  ;;  %s1892_s11 = sshll.u32 %s2046_s10, 4  ;;  %s1893_s11 = int_to_ptr.vmem [resolvable:$false] %s1892_s11 }
 0xa29   : > { %s1894_s19 = scalar_lea.vmem %s1893_s11, 512  ;;  %p1895_p11 = scmp.lt.s32.totalorder %s2671_s12, %s1893_s11 }
 0xa2a   : > { %s1483_s30 = sshll.u32 %s2829_s8, 1  ;;  %s1484_s27 = sshll.u32 %s2830_s5, 2 }
 0xa2b   : > { %s1292_s3 = sadd.s32 %s1484_s27, %s1483_s30  ;;  %p2834_p1 = scmp.ne.s32.totalorder %s2831_s1, 0 }
 0xa2c   : > { %s1485_s20 = sshll.u32 %s1292_s3, 7  ;;  %s2833_s4 = smov %s2832_s13 }
 0xa2d   : > { %s2676_s22 = scalar_lea.hbm %s2832_s13, %s1485_s20  ;;  %p1890_p7 = pnand %p1889_p3, %p2834_p1 }
 0xa2e   : > { %p1896_p10 = scmp.lt.s32.totalorder %s1894_s19, %s1888_s18 }
 0xa2f   : > { %p1891_p5 = pneg %p1890_p7 }
 0xa30   : > { %p1897_p4 = por %p1896_p10, %p1895_p11 }
 0xa32   : > { %p1898_p2 = pnand %p1897_p4, %p1891_p5 }
 0xa34   : > { %1901 = shalt.err (!%p1898_p2)
}
 0xa35   : > { %s1902_s16 = scalar_lea.hbm %s2676_s22, 256  ;;  %s1906_s5 = scalar_lea.hbm %s2833_s4, 1024 }
 0xa36   : > { %p1903_p8 = scmp.ne.s32.totalorder %s2676_s22, %s1902_s16  ;;  %p1907_p9 = scmp.lt.u32.totalorder %s2676_s22, %s2833_s4 }
 0xa37   : > { %p1908_p13 = scmp.lt.u32.totalorder %s1906_s5, %s1902_s16  ;;  %p1910_p3 = scmp.lt.u32.totalorder %s1902_s16, %s2676_s22 }
 0xa38   : > { %p1904_p6 = pnand %p1903_p8, %p2834_p1 }
 0xa39   : > { %p1909_p12 = por %p1908_p13, %p1907_p9 }
 0xa3a   : > { %p1905_p0 = pneg %p1904_p6 }
 0xa3b   : > { %p1911_p7 = por %p1910_p3, %p1909_p12 }
 0xa3d   : > { %p1912_p5 = pnand %p1911_p7, %p1905_p0 }
 0xa3f   : > { %1915 = shalt.err (!%p1912_p5)
}
 0xa40   : > { %s2047_s3 = smov 128   ;;  %s2048_s20 = smov 8  }
 0xa41   : > { %1596 = dma.vmem_to_hbm [thread:$0]  (%p2834_p1), %s2671_s12, 256, %s2676_s22, %s1280_s6, %s2047_s3, %s2047_s3, %s2048_s20  }
 0xa42 PF: > { %s2835_s28 = sld [smem:[#allocation17_spill]]  ;;  %p1613_p11 = scmp.ge.s32.totalorder %s2030_s24, 2 }
 0xa43   : > { %s2836_s29 = sld [smem:[#allocation29_spill]] }
 0xa48   : > { %s1310_s13 = sand.u32 1, %s2835_s28  }
 0xa49   : > { %p2837_p10 = scmp.ne.s32.totalorder %s2836_s29, 0  ;;  %s1311_s18 = scalar_lea.sflag [#allocation8], %s1310_s13 }
 0xa4b   : > { %p1609_p4 = pnand %p1613_p11, %p2837_p10 }
 0xa4d   : > { %1977 = dma.done.wait (!%p1609_p4), %s1311_s18, 256  }
 0xa4e   : > { %1979 = vsyncadd (!%p1609_p4), %s1311_s18, 4294967040  ;;  %s22_s24 = sadd.s32 1, %s2030_s24   ;;  %s2839_s12 = sld [smem:[#allocation16_spill]] }
 0xa4f   : > { %p2707_p2 = scmp.ge.s32.totalorder %s22_s24, 14   ;;  %s2840_s9 = sld [smem:[#allocation18_spill]] }
 0xa50   : > { %s2841_s1 = smov %s2284_s15  ;;  %s2842_s19 = sld [smem:[#allocation22_spill]] }
 0xa51   : > { %s2843_s22 = sld [smem:[#allocation26_spill]]  ;;  %s2844_s6 = sld [smem:[#allocation28_spill]] }
 0xa52   : > { %s2845_s13 = smov %s1990_s14  ;;  %s2846_s14 = smov %s2289_s25 }
 0xa53   : > { %s2848_s16 = smov %s2002_s17  ;;  %s2849_s17 = smov %s2841_s1 }
 0xa54   : > { %s2850_s18 = smov %s2018_s21  ;;  %s2851_s20 = smov %s2026_s23 }
 0xa55   : > { %s2847_s15 = smov %s2840_s9  ;;  %s2852_s21 = smov %s2855_s26 }
 0xa56   :  { %21 = sbr.rel (!%p2707_p2) target bundleno = 15 (0xf), region = 115 }
 0xa57   : > { %s2853_s23 = smov %s2844_s6 }
 0xa5d   :  { %1316 = vsyncpa [#allocation7], 1 }
 0xa5e   :  { %1318 = vsyncpa [#allocation7 + $0x1], 1 }
 0xa5f   :  { %1319 = vsyncpa [#allocation10], 1 }
 0xa60   :  { %1321 = vsyncpa [#allocation10 + $0x1], 1 }
 0xa61   :  { %1322 = vsyncpa [#allocation8], 1 }
 0xa62   :  { %1324 = vsyncpa [#allocation8 + $0x1], 1 }

</bundles_post_ra>
